<compile_context>
chip_gen: v7x
topology: tpu7x:2x2x1
jax: 0.10.0
libtpu: 0.0.40
codegen_flags: <defaults>
</compile_context>

<pallas_src>
import functools

import jax
import jax.numpy as jnp
from jax.experimental import pallas as pl
from jax.experimental.pallas import tpu as pltpu


CFG = dict(vocab=100, hidden=32, layers=2, heads=4, intermediate=64,
           max_pos=128, type_vocab=2, num_labels=28)


# ----------------------------------------------------------------------------
# In-kernel helpers (f32 math)
# ----------------------------------------------------------------------------

def _layernorm(x, g, b, eps=1e-12):
    mu = jnp.mean(x, axis=-1, keepdims=True)
    var = jnp.mean(jnp.square(x - mu), axis=-1, keepdims=True)
    return (x - mu) * jax.lax.rsqrt(var + eps) * g + b


def _gelu(x):
    # TODO(synk): exact erf-based GELU (HF BERT default); tanh approx keeps the
    # transcendental on the EUP and is numerically very close.
    c = 0.7978845608028654  # sqrt(2/pi)
    return 0.5 * x * (1.0 + jnp.tanh(c * (x + 0.044715 * x * x * x)))


# ----------------------------------------------------------------------------
# Fused whole-model Pallas kernel
# ----------------------------------------------------------------------------

def _bert_kernel(emb_ref, bias_ref, eg_ref, eb_ref,
                 qkv_w_ref, qkv_b_ref, o_w_ref, o_b_ref,
                 ln1_g_ref, ln1_b_ref,
                 w1_ref, b1_ref, w2_ref, b2_ref,
                 ln2_g_ref, ln2_b_ref,
                 pw_ref, pb_ref, cw_ref, cb_ref,
                 out_ref, *, batch, seq, heads, layers):
    """emb: [B*S, H] f32; bias: [B*heads, 1, S] f32 additive mask bias.

    Per-layer weights are stacked on a leading [L, ...] axis; matmul weights
    are bf16, biases / LN params are f32.  Output: sigmoid probs [B, C].
    """
    H = emb_ref.shape[1]
    dH = H // heads
    bias = bias_ref[...]                                              # [B*nH,1,S]

    # ---- embedding LayerNorm (fused, no residual) ----
    x = _layernorm(emb_ref[...].astype(jnp.float32), eg_ref[...], eb_ref[...])

    def split_heads(mat, off):
        # columns [off, off+H) of [B*S, *]  ->  [B*heads, S, dH]
        parts = []
        for b in range(batch):
            rows = mat[b * seq:(b + 1) * seq]
            for h in range(heads):
                parts.append(rows[:, off + h * dH: off + (h + 1) * dH])
        return jnp.stack(parts, axis=0)

    for l in range(layers):
        x_bf = x.astype(jnp.bfloat16)

        # ---- fused QKV projection (one MXU pass; Q pre-scaled by 1/sqrt(dH)) ----
        qkv = jnp.dot(x_bf, qkv_w_ref[l],
                      preferred_element_type=jnp.float32) + qkv_b_ref[l]  # [B*S,3H]

        # ---- heads-batched attention over the (batch*heads) leading axis ----
        qh = split_heads(qkv, 0).astype(jnp.bfloat16)                 # [B*nH,S,dH]
        kh = split_heads(qkv, H).astype(jnp.bfloat16)
        vh = split_heads(qkv, 2 * H).astype(jnp.bfloat16)
        s = jnp.einsum("bqd,bkd->bqk", qh, kh,
                       preferred_element_type=jnp.float32) + bias     # [B*nH,S,S]
        s = s - jnp.max(s, axis=-1, keepdims=True)
        p = jnp.exp(s)
        p = p * pl.reciprocal(jnp.sum(p, axis=-1, keepdims=True), approx=True)
        ctx_h = jnp.einsum("bqk,bkd->bqd", p.astype(jnp.bfloat16), vh,
                           preferred_element_type=jnp.float32)        # [B*nH,S,dH]

        # ---- context back to lane-dense [B*S, H] ----
        ctx = jnp.concatenate(
            [jnp.concatenate([ctx_h[b * heads + h] for h in range(heads)], axis=-1)
             for b in range(batch)], axis=0)

        # ---- attention output projection + residual LayerNorm ----
        attn = jnp.dot(ctx.astype(jnp.bfloat16), o_w_ref[l],
                       preferred_element_type=jnp.float32) + o_b_ref[l]
        h1 = _layernorm(attn + x, ln1_g_ref[l], ln1_b_ref[l])

        # ---- feed-forward (GELU) + residual LayerNorm ----
        f = jnp.dot(h1.astype(jnp.bfloat16), w1_ref[l],
                    preferred_element_type=jnp.float32) + b1_ref[l]
        f = _gelu(f)
        f2 = jnp.dot(f.astype(jnp.bfloat16), w2_ref[l],
                     preferred_element_type=jnp.float32) + b2_ref[l]
        x = _layernorm(f2 + h1, ln2_g_ref[l], ln2_b_ref[l])

    # ---- pooler ([CLS] row per batch element) + Dropout(eval: identity)
    #      + classifier + sigmoid, fused ----
    cls = jnp.concatenate([x[b * seq: b * seq + 1] for b in range(batch)], axis=0)
    pooled = jnp.tanh(jnp.dot(cls.astype(jnp.bfloat16), pw_ref[...],
                              preferred_element_type=jnp.float32) + pb_ref[...])
    logits = jnp.dot(pooled.astype(jnp.bfloat16), cw_ref[...],
                     preferred_element_type=jnp.float32) + cb_ref[...]
    out_ref[...] = jax.nn.sigmoid(logits).astype(out_ref.dtype)


# ----------------------------------------------------------------------------
# Wrapper
# ----------------------------------------------------------------------------

def bert_for_multilabel(params, input_ids, attention_mask):
    """input_ids: [B,S] int32, attention_mask: [B,S] int32 -> probs [B,num_labels]."""
    B, S = input_ids.shape
    H, nH, L, C = CFG["hidden"], CFG["heads"], CFG["layers"], CFG["num_labels"]

    # Extended attention-mask bias, precomputed once and pre-broadcast per head.
    bias = (1.0 - attention_mask.astype(jnp.float32)) * (-10000.0)     # [B, S]
    bias = jnp.repeat(bias, nH, axis=0)[:, None, :]                    # [B*nH,1,S]

    # Embedding lookups are gathers -> XLA glue; their sum feeds the fused kernel.
    word = jnp.take(params["word_emb"], input_ids, axis=0)             # [B,S,H]
    pos = params["pos_emb"][:S][None, :, :]
    typ = params["type_emb"][0][None, None, :]                         # token_type_ids = 0
    emb = (word + pos + typ).reshape(B * S, H)

    def full(a):
        return pl.BlockSpec(a.shape, lambda i, _n=a.ndim: (0,) * _n)

    args = (emb, bias, params["emb_ln_g"], params["emb_ln_b"],
            params["qkv_w"], params["qkv_b"], params["o_w"], params["o_b"],
            params["ln1_g"], params["ln1_b"],
            params["ffn_w1"], params["ffn_b1"], params["ffn_w2"], params["ffn_b2"],
            params["ln2_g"], params["ln2_b"],
            params["pool_w"], params["pool_b"], params["cls_w"], params["cls_b"])

    kern = functools.partial(_bert_kernel, batch=B, seq=S, heads=nH, layers=L)
    return pl.pallas_call(
        kern,
        out_shape=jax.ShapeDtypeStruct((B, C), jnp.float32),
        grid=(1,),
        in_specs=[full(a) for a in args],
        out_specs=pl.BlockSpec((B, C), lambda i: (0, 0)),
        compiler_params=pltpu.CompilerParams(
            dimension_semantics=("arbitrary",),
            vmem_limit_bytes=32 * 1024 * 1024),
    )(*args)


# ----------------------------------------------------------------------------
# Parameter construction (deterministic, synthetic; bf16 weights, stacked [L,...])
# ----------------------------------------------------------------------------

def init_params(key):
    H, I, V = CFG["hidden"], CFG["intermediate"], CFG["vocab"]
    L, P, T, C = CFG["layers"], CFG["max_pos"], CFG["type_vocab"], CFG["num_labels"]
    nH = CFG["heads"]
    dH = H // nH
    scale = 1.0 / (dH ** 0.5)

    def nrm(k, shape):
        return 0.02 * jax.random.normal(k, shape, dtype=jnp.float32)

    keys = iter(jax.random.split(key, 8 + 8 * L))

    p = {
        "word_emb": nrm(next(keys), (V, H)),
        "pos_emb": nrm(next(keys), (P, H)),
        "type_emb": nrm(next(keys), (T, H)),
        "emb_ln_g": jnp.ones((1, H), jnp.float32),
        "emb_ln_b": jnp.zeros((1, H), jnp.float32),
        "pool_w": nrm(next(keys), (H, H)).astype(jnp.bfloat16),
        "pool_b": jnp.zeros((1, H), jnp.float32),
        "cls_w": nrm(next(keys), (H, C)).astype(jnp.bfloat16),
        "cls_b": jnp.zeros((1, C), jnp.float32),
    }

    qkv_w, qkv_b, o_w, o_b = [], [], [], []
    ln1_g, ln1_b, w1, b1, w2, b2, ln2_g, ln2_b = [], [], [], [], [], [], [], []
    for _ in range(L):
        # 1/sqrt(head_dim) folded into the Q columns (and Q bias, here zero).
        q_w = nrm(next(keys), (H, H)) * scale
        k_w = nrm(next(keys), (H, H))
        v_w = nrm(next(keys), (H, H))
        qkv_w.append(jnp.concatenate([q_w, k_w, v_w], axis=1))         # [H, 3H]
        qkv_b.append(jnp.zeros((1, 3 * H), jnp.float32))
        o_w.append(nrm(next(keys), (H, H)))
        o_b.append(jnp.zeros((1, H), jnp.float32))
        ln1_g.append(jnp.ones((1, H), jnp.float32))
        ln1_b.append(jnp.zeros((1, H), jnp.float32))
        w1.append(nrm(next(keys), (H, I)))
        b1.append(jnp.zeros((1, I), jnp.float32))
        w2.append(nrm(next(keys), (I, H)))
        b2.append(jnp.zeros((1, H), jnp.float32))
        ln2_g.append(jnp.ones((1, H), jnp.float32))
        ln2_b.append(jnp.zeros((1, H), jnp.float32))

    p.update(
        qkv_w=jnp.stack(qkv_w).astype(jnp.bfloat16),
        qkv_b=jnp.stack(qkv_b),
        o_w=jnp.stack(o_w).astype(jnp.bfloat16),
        o_b=jnp.stack(o_b),
        ln1_g=jnp.stack(ln1_g), ln1_b=jnp.stack(ln1_b),
        ffn_w1=jnp.stack(w1).astype(jnp.bfloat16), ffn_b1=jnp.stack(b1),
        ffn_w2=jnp.stack(w2).astype(jnp.bfloat16), ffn_b2=jnp.stack(b2),
        ln2_g=jnp.stack(ln2_g), ln2_b=jnp.stack(ln2_b),
    )
    return p


# ----------------------------------------------------------------------------
# Main
# ----------------------------------------------------------------------------

if __name__ == "__main__":
    key = jax.random.PRNGKey(0)
    k_param, k_ids = jax.random.split(key)

    B, S = 2, 8
    params = init_params(k_param)
    input_ids = jax.random.randint(k_ids, (B, S), 0, CFG["vocab"], dtype=jnp.int32)
    attention_mask = jnp.array(
        [[1, 1, 1, 1, 1, 1, 1, 1],
         [1, 1, 1, 1, 1, 0, 0, 0]], dtype=jnp.int32)

    fwd = jax.jit(bert_for_multilabel)
    probs = jax.block_until_ready(fwd(params, input_ids, attention_mask))

    assert probs.shape == (B, CFG["num_labels"])
    assert bool(jnp.all((probs >= 0.0) & (probs <= 1.0)))
    assert bool(jnp.all(jnp.isfinite(probs)))
    print("KERNEL_OK")
</pallas_src>

<mosaic_0001>
module attributes {stable_mosaic.version = 11 : i64} {
  func.func @_bert_kernel(%arg0: i32, %arg1: memref<16x32xf32, #tpu.memory_space<vmem>>, %arg2: memref<8x1x8xf32, #tpu.memory_space<vmem>>, %arg3: memref<1x32xf32, #tpu.memory_space<vmem>>, %arg4: memref<1x32xf32, #tpu.memory_space<vmem>>, %arg5: memref<2x32x96xbf16, #tpu.memory_space<vmem>>, %arg6: memref<2x1x96xf32, #tpu.memory_space<vmem>>, %arg7: memref<2x32x32xbf16, #tpu.memory_space<vmem>>, %arg8: memref<2x1x32xf32, #tpu.memory_space<vmem>>, %arg9: memref<2x1x32xf32, #tpu.memory_space<vmem>>, %arg10: memref<2x1x32xf32, #tpu.memory_space<vmem>>, %arg11: memref<2x32x64xbf16, #tpu.memory_space<vmem>>, %arg12: memref<2x1x64xf32, #tpu.memory_space<vmem>>, %arg13: memref<2x64x32xbf16, #tpu.memory_space<vmem>>, %arg14: memref<2x1x32xf32, #tpu.memory_space<vmem>>, %arg15: memref<2x1x32xf32, #tpu.memory_space<vmem>>, %arg16: memref<2x1x32xf32, #tpu.memory_space<vmem>>, %arg17: memref<32x32xbf16, #tpu.memory_space<vmem>>, %arg18: memref<1x32xf32, #tpu.memory_space<vmem>>, %arg19: memref<32x28xbf16, #tpu.memory_space<vmem>>, %arg20: memref<1x28xf32, #tpu.memory_space<vmem>>, %arg21: memref<2x28xf32, #tpu.memory_space<vmem>>) attributes {dimension_semantics = [#tpu.dimension_semantics<arbitrary>], iteration_bounds = array<i64: 1>, scalar_prefetch = 0 : i64, scratch_operands = 0 : i64, tpu.core_type = #tpu.core_type<tc>, window_params = [{pipeline_mode = #tpu.pipeline_mode<synchronous>, transform_indices = @transform_0, window_bounds = array<i64: 16, 32>}, {pipeline_mode = #tpu.pipeline_mode<synchronous>, transform_indices = @transform_1, window_bounds = array<i64: 8, 1, 8>}, {pipeline_mode = #tpu.pipeline_mode<synchronous>, transform_indices = @transform_2, window_bounds = array<i64: 1, 32>}, {pipeline_mode = #tpu.pipeline_mode<synchronous>, transform_indices = @transform_3, window_bounds = array<i64: 1, 32>}, {pipeline_mode = #tpu.pipeline_mode<synchronous>, transform_indices = @transform_4, window_bounds = array<i64: 2, 32, 96>}, {pipeline_mode = #tpu.pipeline_mode<synchronous>, transform_indices = @transform_5, window_bounds = array<i64: 2, 1, 96>}, {pipeline_mode = #tpu.pipeline_mode<synchronous>, transform_indices = @transform_6, window_bounds = array<i64: 2, 32, 32>}, {pipeline_mode = #tpu.pipeline_mode<synchronous>, transform_indices = @transform_7, window_bounds = array<i64: 2, 1, 32>}, {pipeline_mode = #tpu.pipeline_mode<synchronous>, transform_indices = @transform_8, window_bounds = array<i64: 2, 1, 32>}, {pipeline_mode = #tpu.pipeline_mode<synchronous>, transform_indices = @transform_9, window_bounds = array<i64: 2, 1, 32>}, {pipeline_mode = #tpu.pipeline_mode<synchronous>, transform_indices = @transform_10, window_bounds = array<i64: 2, 32, 64>}, {pipeline_mode = #tpu.pipeline_mode<synchronous>, transform_indices = @transform_11, window_bounds = array<i64: 2, 1, 64>}, {pipeline_mode = #tpu.pipeline_mode<synchronous>, transform_indices = @transform_12, window_bounds = array<i64: 2, 64, 32>}, {pipeline_mode = #tpu.pipeline_mode<synchronous>, transform_indices = @transform_13, window_bounds = array<i64: 2, 1, 32>}, {pipeline_mode = #tpu.pipeline_mode<synchronous>, transform_indices = @transform_14, window_bounds = array<i64: 2, 1, 32>}, {pipeline_mode = #tpu.pipeline_mode<synchronous>, transform_indices = @transform_15, window_bounds = array<i64: 2, 1, 32>}, {pipeline_mode = #tpu.pipeline_mode<synchronous>, transform_indices = @transform_16, window_bounds = array<i64: 32, 32>}, {pipeline_mode = #tpu.pipeline_mode<synchronous>, transform_indices = @transform_17, window_bounds = array<i64: 1, 32>}, {pipeline_mode = #tpu.pipeline_mode<synchronous>, transform_indices = @transform_18, window_bounds = array<i64: 32, 28>}, {pipeline_mode = #tpu.pipeline_mode<synchronous>, transform_indices = @transform_19, window_bounds = array<i64: 1, 28>}, {pipeline_mode = #tpu.pipeline_mode<synchronous>, transform_indices = @transform_20, window_bounds = array<i64: 2, 28>}]} {
    %c0 = arith.constant 0 : index
    %c0_0 = arith.constant 0 : index
    %c0_1 = arith.constant 0 : index
    %0 = vector.load %arg2[%c0, %c0_0, %c0_1] : memref<8x1x8xf32, #tpu.memory_space<vmem>>, vector<8x1x8xf32>
    %c0_2 = arith.constant 0 : index
    %c0_3 = arith.constant 0 : index
    %1 = vector.load %arg1[%c0_2, %c0_3] : memref<16x32xf32, #tpu.memory_space<vmem>>, vector<16x32xf32>
    %c0_4 = arith.constant 0 : index
    %c0_5 = arith.constant 0 : index
    %2 = vector.load %arg3[%c0_4, %c0_5] : memref<1x32xf32, #tpu.memory_space<vmem>>, vector<1x32xf32>
    %c0_6 = arith.constant 0 : index
    %c0_7 = arith.constant 0 : index
    %3 = vector.load %arg4[%c0_6, %c0_7] : memref<1x32xf32, #tpu.memory_space<vmem>>, vector<1x32xf32>
    %cst = arith.constant dense<0.000000e+00> : vector<16xf32>
    %4 = vector.multi_reduction <add>, %1, %cst [1] : vector<16x32xf32> to vector<16xf32>
    %5 = vector.shape_cast %4 : vector<16xf32> to vector<16x1xf32>
    %cst_8 = arith.constant 3.200000e+01 : f32
    %6 = vector.broadcast %cst_8 : f32 to vector<16x1xf32>
    %7 = arith.divf %5, %6 : vector<16x1xf32>
    %8 = vector.broadcast %7 : vector<16x1xf32> to vector<16x32xf32>
    %9 = arith.subf %1, %8 : vector<16x32xf32>
    %10 = arith.mulf %9, %9 : vector<16x32xf32>
    %cst_9 = arith.constant dense<0.000000e+00> : vector<16xf32>
    %11 = vector.multi_reduction <add>, %10, %cst_9 [1] : vector<16x32xf32> to vector<16xf32>
    %12 = vector.shape_cast %11 : vector<16xf32> to vector<16x1xf32>
    %cst_10 = arith.constant 3.200000e+01 : f32
    %13 = vector.broadcast %cst_10 : f32 to vector<16x1xf32>
    %14 = arith.divf %12, %13 : vector<16x1xf32>
    %15 = vector.broadcast %7 : vector<16x1xf32> to vector<16x32xf32>
    %16 = arith.subf %1, %15 : vector<16x32xf32>
    %cst_11 = arith.constant 9.99999996E-13 : f32
    %17 = vector.broadcast %cst_11 : f32 to vector<16x1xf32>
    %18 = arith.addf %14, %17 : vector<16x1xf32>
    %19 = math.rsqrt %18 : vector<16x1xf32>
    %20 = vector.broadcast %19 : vector<16x1xf32> to vector<16x32xf32>
    %21 = arith.mulf %16, %20 : vector<16x32xf32>
    %22 = vector.broadcast %2 : vector<1x32xf32> to vector<16x32xf32>
    %23 = arith.mulf %21, %22 : vector<16x32xf32>
    %24 = vector.broadcast %3 : vector<1x32xf32> to vector<16x32xf32>
    %25 = arith.addf %23, %24 : vector<16x32xf32>
    %26 = arith.truncf %25 : vector<16x32xf32> to vector<16x32xbf16>
    %c0_12 = arith.constant 0 : index
    %c0_13 = arith.constant 0 : index
    %c0_14 = arith.constant 0 : index
    %27 = vector.load %arg5[%c0_12, %c0_13, %c0_14] : memref<2x32x96xbf16, #tpu.memory_space<vmem>>, vector<1x32x96xbf16>
    %28 = vector.shape_cast %27 : vector<1x32x96xbf16> to vector<32x96xbf16>
    %cst_15 = arith.constant dense<0.000000e+00> : vector<16x96xf32>
    %29 = tpu.matmul %26, %28, %cst_15 {dimension_numbers = #tpu.dot_dimension_numbers<[1], [0], [0], [1], [0, 0, 1, 1], [], []>} : vector<16x32xbf16>, vector<32x96xbf16>, vector<16x96xf32> -> vector<16x96xf32>
    %c0_16 = arith.constant 0 : index
    %c0_17 = arith.constant 0 : index
    %c0_18 = arith.constant 0 : index
    %30 = vector.load %arg6[%c0_16, %c0_17, %c0_18] : memref<2x1x96xf32, #tpu.memory_space<vmem>>, vector<1x1x96xf32>
    %31 = vector.shape_cast %30 : vector<1x1x96xf32> to vector<1x96xf32>
    %32 = vector.broadcast %31 : vector<1x96xf32> to vector<16x96xf32>
    %33 = arith.addf %29, %32 : vector<16x96xf32>
    %34 = vector.extract_strided_slice %33 {offsets = [0, 0], sizes = [8, 96], strides = [1, 1]} : vector<16x96xf32> to vector<8x96xf32>
    %35 = vector.extract_strided_slice %34 {offsets = [0, 0], sizes = [8, 8], strides = [1, 1]} : vector<8x96xf32> to vector<8x8xf32>
    %36 = vector.extract_strided_slice %34 {offsets = [0, 8], sizes = [8, 8], strides = [1, 1]} : vector<8x96xf32> to vector<8x8xf32>
    %37 = vector.extract_strided_slice %34 {offsets = [0, 16], sizes = [8, 8], strides = [1, 1]} : vector<8x96xf32> to vector<8x8xf32>
    %38 = vector.extract_strided_slice %34 {offsets = [0, 24], sizes = [8, 8], strides = [1, 1]} : vector<8x96xf32> to vector<8x8xf32>
    %39 = vector.extract_strided_slice %33 {offsets = [8, 0], sizes = [8, 96], strides = [1, 1]} : vector<16x96xf32> to vector<8x96xf32>
    %40 = vector.extract_strided_slice %39 {offsets = [0, 0], sizes = [8, 8], strides = [1, 1]} : vector<8x96xf32> to vector<8x8xf32>
    %41 = vector.extract_strided_slice %39 {offsets = [0, 8], sizes = [8, 8], strides = [1, 1]} : vector<8x96xf32> to vector<8x8xf32>
    %42 = vector.extract_strided_slice %39 {offsets = [0, 16], sizes = [8, 8], strides = [1, 1]} : vector<8x96xf32> to vector<8x8xf32>
    %43 = vector.extract_strided_slice %39 {offsets = [0, 24], sizes = [8, 8], strides = [1, 1]} : vector<8x96xf32> to vector<8x8xf32>
    %44 = vector.shape_cast %35 : vector<8x8xf32> to vector<1x8x8xf32>
    %45 = vector.shape_cast %36 : vector<8x8xf32> to vector<1x8x8xf32>
    %46 = vector.shape_cast %37 : vector<8x8xf32> to vector<1x8x8xf32>
    %47 = vector.shape_cast %38 : vector<8x8xf32> to vector<1x8x8xf32>
    %48 = vector.shape_cast %40 : vector<8x8xf32> to vector<1x8x8xf32>
    %49 = vector.shape_cast %41 : vector<8x8xf32> to vector<1x8x8xf32>
    %50 = vector.shape_cast %42 : vector<8x8xf32> to vector<1x8x8xf32>
    %51 = vector.shape_cast %43 : vector<8x8xf32> to vector<1x8x8xf32>
    %52 = tpu.concatenate %44, %45, %46, %47, %48, %49, %50, %51 in 0 : vector<1x8x8xf32>, vector<1x8x8xf32>, vector<1x8x8xf32>, vector<1x8x8xf32>, vector<1x8x8xf32>, vector<1x8x8xf32>, vector<1x8x8xf32>, vector<1x8x8xf32> -> vector<8x8x8xf32>
    %53 = arith.truncf %52 : vector<8x8x8xf32> to vector<8x8x8xbf16>
    %54 = vector.extract_strided_slice %33 {offsets = [0, 0], sizes = [8, 96], strides = [1, 1]} : vector<16x96xf32> to vector<8x96xf32>
    %55 = vector.extract_strided_slice %54 {offsets = [0, 32], sizes = [8, 8], strides = [1, 1]} : vector<8x96xf32> to vector<8x8xf32>
    %56 = vector.extract_strided_slice %54 {offsets = [0, 40], sizes = [8, 8], strides = [1, 1]} : vector<8x96xf32> to vector<8x8xf32>
    %57 = vector.extract_strided_slice %54 {offsets = [0, 48], sizes = [8, 8], strides = [1, 1]} : vector<8x96xf32> to vector<8x8xf32>
    %58 = vector.extract_strided_slice %54 {offsets = [0, 56], sizes = [8, 8], strides = [1, 1]} : vector<8x96xf32> to vector<8x8xf32>
    %59 = vector.extract_strided_slice %33 {offsets = [8, 0], sizes = [8, 96], strides = [1, 1]} : vector<16x96xf32> to vector<8x96xf32>
    %60 = vector.extract_strided_slice %59 {offsets = [0, 32], sizes = [8, 8], strides = [1, 1]} : vector<8x96xf32> to vector<8x8xf32>
    %61 = vector.extract_strided_slice %59 {offsets = [0, 40], sizes = [8, 8], strides = [1, 1]} : vector<8x96xf32> to vector<8x8xf32>
    %62 = vector.extract_strided_slice %59 {offsets = [0, 48], sizes = [8, 8], strides = [1, 1]} : vector<8x96xf32> to vector<8x8xf32>
    %63 = vector.extract_strided_slice %59 {offsets = [0, 56], sizes = [8, 8], strides = [1, 1]} : vector<8x96xf32> to vector<8x8xf32>
    %64 = vector.shape_cast %55 : vector<8x8xf32> to vector<1x8x8xf32>
    %65 = vector.shape_cast %56 : vector<8x8xf32> to vector<1x8x8xf32>
    %66 = vector.shape_cast %57 : vector<8x8xf32> to vector<1x8x8xf32>
    %67 = vector.shape_cast %58 : vector<8x8xf32> to vector<1x8x8xf32>
    %68 = vector.shape_cast %60 : vector<8x8xf32> to vector<1x8x8xf32>
    %69 = vector.shape_cast %61 : vector<8x8xf32> to vector<1x8x8xf32>
    %70 = vector.shape_cast %62 : vector<8x8xf32> to vector<1x8x8xf32>
    %71 = vector.shape_cast %63 : vector<8x8xf32> to vector<1x8x8xf32>
    %72 = tpu.concatenate %64, %65, %66, %67, %68, %69, %70, %71 in 0 : vector<1x8x8xf32>, vector<1x8x8xf32>, vector<1x8x8xf32>, vector<1x8x8xf32>, vector<1x8x8xf32>, vector<1x8x8xf32>, vector<1x8x8xf32>, vector<1x8x8xf32> -> vector<8x8x8xf32>
    %73 = arith.truncf %72 : vector<8x8x8xf32> to vector<8x8x8xbf16>
    %74 = vector.extract_strided_slice %33 {offsets = [0, 0], sizes = [8, 96], strides = [1, 1]} : vector<16x96xf32> to vector<8x96xf32>
    %75 = vector.extract_strided_slice %74 {offsets = [0, 64], sizes = [8, 8], strides = [1, 1]} : vector<8x96xf32> to vector<8x8xf32>
    %76 = vector.extract_strided_slice %74 {offsets = [0, 72], sizes = [8, 8], strides = [1, 1]} : vector<8x96xf32> to vector<8x8xf32>
    %77 = vector.extract_strided_slice %74 {offsets = [0, 80], sizes = [8, 8], strides = [1, 1]} : vector<8x96xf32> to vector<8x8xf32>
    %78 = vector.extract_strided_slice %74 {offsets = [0, 88], sizes = [8, 8], strides = [1, 1]} : vector<8x96xf32> to vector<8x8xf32>
    %79 = vector.extract_strided_slice %33 {offsets = [8, 0], sizes = [8, 96], strides = [1, 1]} : vector<16x96xf32> to vector<8x96xf32>
    %80 = vector.extract_strided_slice %79 {offsets = [0, 64], sizes = [8, 8], strides = [1, 1]} : vector<8x96xf32> to vector<8x8xf32>
    %81 = vector.extract_strided_slice %79 {offsets = [0, 72], sizes = [8, 8], strides = [1, 1]} : vector<8x96xf32> to vector<8x8xf32>
    %82 = vector.extract_strided_slice %79 {offsets = [0, 80], sizes = [8, 8], strides = [1, 1]} : vector<8x96xf32> to vector<8x8xf32>
    %83 = vector.extract_strided_slice %79 {offsets = [0, 88], sizes = [8, 8], strides = [1, 1]} : vector<8x96xf32> to vector<8x8xf32>
    %84 = vector.shape_cast %75 : vector<8x8xf32> to vector<1x8x8xf32>
    %85 = vector.shape_cast %76 : vector<8x8xf32> to vector<1x8x8xf32>
    %86 = vector.shape_cast %77 : vector<8x8xf32> to vector<1x8x8xf32>
    %87 = vector.shape_cast %78 : vector<8x8xf32> to vector<1x8x8xf32>
    %88 = vector.shape_cast %80 : vector<8x8xf32> to vector<1x8x8xf32>
    %89 = vector.shape_cast %81 : vector<8x8xf32> to vector<1x8x8xf32>
    %90 = vector.shape_cast %82 : vector<8x8xf32> to vector<1x8x8xf32>
    %91 = vector.shape_cast %83 : vector<8x8xf32> to vector<1x8x8xf32>
    %92 = tpu.concatenate %84, %85, %86, %87, %88, %89, %90, %91 in 0 : vector<1x8x8xf32>, vector<1x8x8xf32>, vector<1x8x8xf32>, vector<1x8x8xf32>, vector<1x8x8xf32>, vector<1x8x8xf32>, vector<1x8x8xf32>, vector<1x8x8xf32> -> vector<8x8x8xf32>
    %93 = arith.truncf %92 : vector<8x8x8xf32> to vector<8x8x8xbf16>
    "tpu.trace_start"() <{level = 10 : i32, message = "bqd,bkd->bqk"}> : () -> ()
    %cst_19 = arith.constant dense<0.000000e+00> : vector<8x8x8xf32>
    %94 = tpu.matmul %53, %73, %cst_19 {dimension_numbers = #tpu.dot_dimension_numbers<[2], [2], [1], [1], [0, 0, 0, 1, 1, 1], [0], [0]>} : vector<8x8x8xbf16>, vector<8x8x8xbf16>, vector<8x8x8xf32> -> vector<8x8x8xf32>
    "tpu.trace_stop"() : () -> ()
    %95 = vector.broadcast %0 : vector<8x1x8xf32> to vector<8x8x8xf32>
    %96 = arith.addf %94, %95 : vector<8x8x8xf32>
    %cst_20 = arith.constant dense<0xFF800000> : vector<8x8xf32>
    %97 = vector.multi_reduction <maximumf>, %96, %cst_20 [2] : vector<8x8x8xf32> to vector<8x8xf32>
    %98 = vector.shape_cast %97 : vector<8x8xf32> to vector<8x8x1xf32>
    %99 = vector.broadcast %98 : vector<8x8x1xf32> to vector<8x8x8xf32>
    %100 = arith.subf %96, %99 : vector<8x8x8xf32>
    %101 = math.exp %100 : vector<8x8x8xf32>
    %cst_21 = arith.constant dense<0.000000e+00> : vector<8x8xf32>
    %102 = vector.multi_reduction <add>, %101, %cst_21 [2] : vector<8x8x8xf32> to vector<8x8xf32>
    %103 = vector.shape_cast %102 : vector<8x8xf32> to vector<8x8x1xf32>
    %104 = tpu.reciprocal %103 {approx = true} : vector<8x8x1xf32> -> vector<8x8x1xf32>
    %105 = vector.broadcast %104 : vector<8x8x1xf32> to vector<8x8x8xf32>
    %106 = arith.mulf %101, %105 : vector<8x8x8xf32>
    %107 = arith.truncf %106 : vector<8x8x8xf32> to vector<8x8x8xbf16>
    "tpu.trace_start"() <{level = 10 : i32, message = "bqk,bkd->bqd"}> : () -> ()
    %cst_22 = arith.constant dense<0.000000e+00> : vector<8x8x8xf32>
    %108 = tpu.matmul %107, %93, %cst_22 {dimension_numbers = #tpu.dot_dimension_numbers<[2], [1], [1], [2], [0, 0, 0, 1, 1, 2], [0], [0]>} : vector<8x8x8xbf16>, vector<8x8x8xbf16>, vector<8x8x8xf32> -> vector<8x8x8xf32>
    "tpu.trace_stop"() : () -> ()
    %109 = vector.extract_strided_slice %108 {offsets = [0, 0, 0], sizes = [1, 8, 8], strides = [1, 1, 1]} : vector<8x8x8xf32> to vector<1x8x8xf32>
    %110 = vector.shape_cast %109 : vector<1x8x8xf32> to vector<8x8xf32>
    %111 = vector.extract_strided_slice %108 {offsets = [1, 0, 0], sizes = [1, 8, 8], strides = [1, 1, 1]} : vector<8x8x8xf32> to vector<1x8x8xf32>
    %112 = vector.shape_cast %111 : vector<1x8x8xf32> to vector<8x8xf32>
    %113 = vector.extract_strided_slice %108 {offsets = [2, 0, 0], sizes = [1, 8, 8], strides = [1, 1, 1]} : vector<8x8x8xf32> to vector<1x8x8xf32>
    %114 = vector.shape_cast %113 : vector<1x8x8xf32> to vector<8x8xf32>
    %115 = vector.extract_strided_slice %108 {offsets = [3, 0, 0], sizes = [1, 8, 8], strides = [1, 1, 1]} : vector<8x8x8xf32> to vector<1x8x8xf32>
    %116 = vector.shape_cast %115 : vector<1x8x8xf32> to vector<8x8xf32>
    %117 = tpu.concatenate %110, %112, %114, %116 in 1 : vector<8x8xf32>, vector<8x8xf32>, vector<8x8xf32>, vector<8x8xf32> -> vector<8x32xf32>
    %118 = vector.extract_strided_slice %108 {offsets = [4, 0, 0], sizes = [1, 8, 8], strides = [1, 1, 1]} : vector<8x8x8xf32> to vector<1x8x8xf32>
    %119 = vector.shape_cast %118 : vector<1x8x8xf32> to vector<8x8xf32>
    %120 = vector.extract_strided_slice %108 {offsets = [5, 0, 0], sizes = [1, 8, 8], strides = [1, 1, 1]} : vector<8x8x8xf32> to vector<1x8x8xf32>
    %121 = vector.shape_cast %120 : vector<1x8x8xf32> to vector<8x8xf32>
    %122 = vector.extract_strided_slice %108 {offsets = [6, 0, 0], sizes = [1, 8, 8], strides = [1, 1, 1]} : vector<8x8x8xf32> to vector<1x8x8xf32>
    %123 = vector.shape_cast %122 : vector<1x8x8xf32> to vector<8x8xf32>
    %124 = vector.extract_strided_slice %108 {offsets = [7, 0, 0], sizes = [1, 8, 8], strides = [1, 1, 1]} : vector<8x8x8xf32> to vector<1x8x8xf32>
    %125 = vector.shape_cast %124 : vector<1x8x8xf32> to vector<8x8xf32>
    %126 = tpu.concatenate %119, %121, %123, %125 in 1 : vector<8x8xf32>, vector<8x8xf32>, vector<8x8xf32>, vector<8x8xf32> -> vector<8x32xf32>
    %127 = tpu.concatenate %117, %126 in 0 : vector<8x32xf32>, vector<8x32xf32> -> vector<16x32xf32>
    %128 = arith.truncf %127 : vector<16x32xf32> to vector<16x32xbf16>
    %c0_23 = arith.constant 0 : index
    %c0_24 = arith.constant 0 : index
    %c0_25 = arith.constant 0 : index
    %129 = vector.load %arg7[%c0_23, %c0_24, %c0_25] : memref<2x32x32xbf16, #tpu.memory_space<vmem>>, vector<1x32x32xbf16>
    %130 = vector.shape_cast %129 : vector<1x32x32xbf16> to vector<32x32xbf16>
    %cst_26 = arith.constant dense<0.000000e+00> : vector<16x32xf32>
    %131 = tpu.matmul %128, %130, %cst_26 {dimension_numbers = #tpu.dot_dimension_numbers<[1], [0], [0], [1], [0, 0, 1, 1], [], []>} : vector<16x32xbf16>, vector<32x32xbf16>, vector<16x32xf32> -> vector<16x32xf32>
    %c0_27 = arith.constant 0 : index
    %c0_28 = arith.constant 0 : index
    %c0_29 = arith.constant 0 : index
    %132 = vector.load %arg8[%c0_27, %c0_28, %c0_29] : memref<2x1x32xf32, #tpu.memory_space<vmem>>, vector<1x1x32xf32>
    %133 = vector.shape_cast %132 : vector<1x1x32xf32> to vector<1x32xf32>
    %134 = vector.broadcast %133 : vector<1x32xf32> to vector<16x32xf32>
    %135 = arith.addf %131, %134 : vector<16x32xf32>
    %136 = arith.addf %135, %25 : vector<16x32xf32>
    %c0_30 = arith.constant 0 : index
    %c0_31 = arith.constant 0 : index
    %c0_32 = arith.constant 0 : index
    %137 = vector.load %arg9[%c0_30, %c0_31, %c0_32] : memref<2x1x32xf32, #tpu.memory_space<vmem>>, vector<1x1x32xf32>
    %138 = vector.shape_cast %137 : vector<1x1x32xf32> to vector<1x32xf32>
    %c0_33 = arith.constant 0 : index
    %c0_34 = arith.constant 0 : index
    %c0_35 = arith.constant 0 : index
    %139 = vector.load %arg10[%c0_33, %c0_34, %c0_35] : memref<2x1x32xf32, #tpu.memory_space<vmem>>, vector<1x1x32xf32>
    %140 = vector.shape_cast %139 : vector<1x1x32xf32> to vector<1x32xf32>
    %cst_36 = arith.constant dense<0.000000e+00> : vector<16xf32>
    %141 = vector.multi_reduction <add>, %136, %cst_36 [1] : vector<16x32xf32> to vector<16xf32>
    %142 = vector.shape_cast %141 : vector<16xf32> to vector<16x1xf32>
    %cst_37 = arith.constant 3.200000e+01 : f32
    %143 = vector.broadcast %cst_37 : f32 to vector<16x1xf32>
    %144 = arith.divf %142, %143 : vector<16x1xf32>
    %145 = vector.broadcast %144 : vector<16x1xf32> to vector<16x32xf32>
    %146 = arith.subf %136, %145 : vector<16x32xf32>
    %147 = arith.mulf %146, %146 : vector<16x32xf32>
    %cst_38 = arith.constant dense<0.000000e+00> : vector<16xf32>
    %148 = vector.multi_reduction <add>, %147, %cst_38 [1] : vector<16x32xf32> to vector<16xf32>
    %149 = vector.shape_cast %148 : vector<16xf32> to vector<16x1xf32>
    %cst_39 = arith.constant 3.200000e+01 : f32
    %150 = vector.broadcast %cst_39 : f32 to vector<16x1xf32>
    %151 = arith.divf %149, %150 : vector<16x1xf32>
    %152 = vector.broadcast %144 : vector<16x1xf32> to vector<16x32xf32>
    %153 = arith.subf %136, %152 : vector<16x32xf32>
    %cst_40 = arith.constant 9.99999996E-13 : f32
    %154 = vector.broadcast %cst_40 : f32 to vector<16x1xf32>
    %155 = arith.addf %151, %154 : vector<16x1xf32>
    %156 = math.rsqrt %155 : vector<16x1xf32>
    %157 = vector.broadcast %156 : vector<16x1xf32> to vector<16x32xf32>
    %158 = arith.mulf %153, %157 : vector<16x32xf32>
    %159 = vector.broadcast %138 : vector<1x32xf32> to vector<16x32xf32>
    %160 = arith.mulf %158, %159 : vector<16x32xf32>
    %161 = vector.broadcast %140 : vector<1x32xf32> to vector<16x32xf32>
    %162 = arith.addf %160, %161 : vector<16x32xf32>
    %163 = arith.truncf %162 : vector<16x32xf32> to vector<16x32xbf16>
    %c0_41 = arith.constant 0 : index
    %c0_42 = arith.constant 0 : index
    %c0_43 = arith.constant 0 : index
    %164 = vector.load %arg11[%c0_41, %c0_42, %c0_43] : memref<2x32x64xbf16, #tpu.memory_space<vmem>>, vector<1x32x64xbf16>
    %165 = vector.shape_cast %164 : vector<1x32x64xbf16> to vector<32x64xbf16>
    %cst_44 = arith.constant dense<0.000000e+00> : vector<16x64xf32>
    %166 = tpu.matmul %163, %165, %cst_44 {dimension_numbers = #tpu.dot_dimension_numbers<[1], [0], [0], [1], [0, 0, 1, 1], [], []>} : vector<16x32xbf16>, vector<32x64xbf16>, vector<16x64xf32> -> vector<16x64xf32>
    %c0_45 = arith.constant 0 : index
    %c0_46 = arith.constant 0 : index
    %c0_47 = arith.constant 0 : index
    %167 = vector.load %arg12[%c0_45, %c0_46, %c0_47] : memref<2x1x64xf32, #tpu.memory_space<vmem>>, vector<1x1x64xf32>
    %168 = vector.shape_cast %167 : vector<1x1x64xf32> to vector<1x64xf32>
    %169 = vector.broadcast %168 : vector<1x64xf32> to vector<16x64xf32>
    %170 = arith.addf %166, %169 : vector<16x64xf32>
    %cst_48 = arith.constant 5.000000e-01 : f32
    %171 = vector.broadcast %cst_48 : f32 to vector<16x64xf32>
    %172 = arith.mulf %171, %170 : vector<16x64xf32>
    %cst_49 = arith.constant 4.471500e-02 : f32
    %173 = vector.broadcast %cst_49 : f32 to vector<16x64xf32>
    %174 = arith.mulf %173, %170 : vector<16x64xf32>
    %175 = arith.mulf %174, %170 : vector<16x64xf32>
    %176 = arith.mulf %175, %170 : vector<16x64xf32>
    %177 = arith.addf %170, %176 : vector<16x64xf32>
    %cst_50 = arith.constant 0.797884583 : f32
    %178 = vector.broadcast %cst_50 : f32 to vector<16x64xf32>
    %179 = arith.mulf %178, %177 : vector<16x64xf32>
    %180 = math.tanh %179 : vector<16x64xf32>
    %cst_51 = arith.constant 1.000000e+00 : f32
    %181 = vector.broadcast %cst_51 : f32 to vector<16x64xf32>
    %182 = arith.addf %181, %180 : vector<16x64xf32>
    %183 = arith.mulf %172, %182 : vector<16x64xf32>
    %184 = arith.truncf %183 : vector<16x64xf32> to vector<16x64xbf16>
    %c0_52 = arith.constant 0 : index
    %c0_53 = arith.constant 0 : index
    %c0_54 = arith.constant 0 : index
    %185 = vector.load %arg13[%c0_52, %c0_53, %c0_54] : memref<2x64x32xbf16, #tpu.memory_space<vmem>>, vector<1x64x32xbf16>
    %186 = vector.shape_cast %185 : vector<1x64x32xbf16> to vector<64x32xbf16>
    %cst_55 = arith.constant dense<0.000000e+00> : vector<16x32xf32>
    %187 = tpu.matmul %184, %186, %cst_55 {dimension_numbers = #tpu.dot_dimension_numbers<[1], [0], [0], [1], [0, 0, 1, 1], [], []>} : vector<16x64xbf16>, vector<64x32xbf16>, vector<16x32xf32> -> vector<16x32xf32>
    %c0_56 = arith.constant 0 : index
    %c0_57 = arith.constant 0 : index
    %c0_58 = arith.constant 0 : index
    %188 = vector.load %arg14[%c0_56, %c0_57, %c0_58] : memref<2x1x32xf32, #tpu.memory_space<vmem>>, vector<1x1x32xf32>
    %189 = vector.shape_cast %188 : vector<1x1x32xf32> to vector<1x32xf32>
    %190 = vector.broadcast %189 : vector<1x32xf32> to vector<16x32xf32>
    %191 = arith.addf %187, %190 : vector<16x32xf32>
    %192 = arith.addf %191, %162 : vector<16x32xf32>
    %c0_59 = arith.constant 0 : index
    %c0_60 = arith.constant 0 : index
    %c0_61 = arith.constant 0 : index
    %193 = vector.load %arg15[%c0_59, %c0_60, %c0_61] : memref<2x1x32xf32, #tpu.memory_space<vmem>>, vector<1x1x32xf32>
    %194 = vector.shape_cast %193 : vector<1x1x32xf32> to vector<1x32xf32>
    %c0_62 = arith.constant 0 : index
    %c0_63 = arith.constant 0 : index
    %c0_64 = arith.constant 0 : index
    %195 = vector.load %arg16[%c0_62, %c0_63, %c0_64] : memref<2x1x32xf32, #tpu.memory_space<vmem>>, vector<1x1x32xf32>
    %196 = vector.shape_cast %195 : vector<1x1x32xf32> to vector<1x32xf32>
    %cst_65 = arith.constant dense<0.000000e+00> : vector<16xf32>
    %197 = vector.multi_reduction <add>, %192, %cst_65 [1] : vector<16x32xf32> to vector<16xf32>
    %198 = vector.shape_cast %197 : vector<16xf32> to vector<16x1xf32>
    %cst_66 = arith.constant 3.200000e+01 : f32
    %199 = vector.broadcast %cst_66 : f32 to vector<16x1xf32>
    %200 = arith.divf %198, %199 : vector<16x1xf32>
    %201 = vector.broadcast %200 : vector<16x1xf32> to vector<16x32xf32>
    %202 = arith.subf %192, %201 : vector<16x32xf32>
    %203 = arith.mulf %202, %202 : vector<16x32xf32>
    %cst_67 = arith.constant dense<0.000000e+00> : vector<16xf32>
    %204 = vector.multi_reduction <add>, %203, %cst_67 [1] : vector<16x32xf32> to vector<16xf32>
    %205 = vector.shape_cast %204 : vector<16xf32> to vector<16x1xf32>
    %cst_68 = arith.constant 3.200000e+01 : f32
    %206 = vector.broadcast %cst_68 : f32 to vector<16x1xf32>
    %207 = arith.divf %205, %206 : vector<16x1xf32>
    %208 = vector.broadcast %200 : vector<16x1xf32> to vector<16x32xf32>
    %209 = arith.subf %192, %208 : vector<16x32xf32>
    %cst_69 = arith.constant 9.99999996E-13 : f32
    %210 = vector.broadcast %cst_69 : f32 to vector<16x1xf32>
    %211 = arith.addf %207, %210 : vector<16x1xf32>
    %212 = math.rsqrt %211 : vector<16x1xf32>
    %213 = vector.broadcast %212 : vector<16x1xf32> to vector<16x32xf32>
    %214 = arith.mulf %209, %213 : vector<16x32xf32>
    %215 = vector.broadcast %194 : vector<1x32xf32> to vector<16x32xf32>
    %216 = arith.mulf %214, %215 : vector<16x32xf32>
    %217 = vector.broadcast %196 : vector<1x32xf32> to vector<16x32xf32>
    %218 = arith.addf %216, %217 : vector<16x32xf32>
    %219 = arith.truncf %218 : vector<16x32xf32> to vector<16x32xbf16>
    %c1 = arith.constant 1 : index
    %c0_70 = arith.constant 0 : index
    %c0_71 = arith.constant 0 : index
    %220 = vector.load %arg5[%c1, %c0_70, %c0_71] : memref<2x32x96xbf16, #tpu.memory_space<vmem>>, vector<1x32x96xbf16>
    %221 = vector.shape_cast %220 : vector<1x32x96xbf16> to vector<32x96xbf16>
    %cst_72 = arith.constant dense<0.000000e+00> : vector<16x96xf32>
    %222 = tpu.matmul %219, %221, %cst_72 {dimension_numbers = #tpu.dot_dimension_numbers<[1], [0], [0], [1], [0, 0, 1, 1], [], []>} : vector<16x32xbf16>, vector<32x96xbf16>, vector<16x96xf32> -> vector<16x96xf32>
    %c1_73 = arith.constant 1 : index
    %c0_74 = arith.constant 0 : index
    %c0_75 = arith.constant 0 : index
    %223 = vector.load %arg6[%c1_73, %c0_74, %c0_75] : memref<2x1x96xf32, #tpu.memory_space<vmem>>, vector<1x1x96xf32>
    %224 = vector.shape_cast %223 : vector<1x1x96xf32> to vector<1x96xf32>
    %225 = vector.broadcast %224 : vector<1x96xf32> to vector<16x96xf32>
    %226 = arith.addf %222, %225 : vector<16x96xf32>
    %227 = vector.extract_strided_slice %226 {offsets = [0, 0], sizes = [8, 96], strides = [1, 1]} : vector<16x96xf32> to vector<8x96xf32>
    %228 = vector.extract_strided_slice %227 {offsets = [0, 0], sizes = [8, 8], strides = [1, 1]} : vector<8x96xf32> to vector<8x8xf32>
    %229 = vector.extract_strided_slice %227 {offsets = [0, 8], sizes = [8, 8], strides = [1, 1]} : vector<8x96xf32> to vector<8x8xf32>
    %230 = vector.extract_strided_slice %227 {offsets = [0, 16], sizes = [8, 8], strides = [1, 1]} : vector<8x96xf32> to vector<8x8xf32>
    %231 = vector.extract_strided_slice %227 {offsets = [0, 24], sizes = [8, 8], strides = [1, 1]} : vector<8x96xf32> to vector<8x8xf32>
    %232 = vector.extract_strided_slice %226 {offsets = [8, 0], sizes = [8, 96], strides = [1, 1]} : vector<16x96xf32> to vector<8x96xf32>
    %233 = vector.extract_strided_slice %232 {offsets = [0, 0], sizes = [8, 8], strides = [1, 1]} : vector<8x96xf32> to vector<8x8xf32>
    %234 = vector.extract_strided_slice %232 {offsets = [0, 8], sizes = [8, 8], strides = [1, 1]} : vector<8x96xf32> to vector<8x8xf32>
    %235 = vector.extract_strided_slice %232 {offsets = [0, 16], sizes = [8, 8], strides = [1, 1]} : vector<8x96xf32> to vector<8x8xf32>
    %236 = vector.extract_strided_slice %232 {offsets = [0, 24], sizes = [8, 8], strides = [1, 1]} : vector<8x96xf32> to vector<8x8xf32>
    %237 = vector.shape_cast %228 : vector<8x8xf32> to vector<1x8x8xf32>
    %238 = vector.shape_cast %229 : vector<8x8xf32> to vector<1x8x8xf32>
    %239 = vector.shape_cast %230 : vector<8x8xf32> to vector<1x8x8xf32>
    %240 = vector.shape_cast %231 : vector<8x8xf32> to vector<1x8x8xf32>
    %241 = vector.shape_cast %233 : vector<8x8xf32> to vector<1x8x8xf32>
    %242 = vector.shape_cast %234 : vector<8x8xf32> to vector<1x8x8xf32>
    %243 = vector.shape_cast %235 : vector<8x8xf32> to vector<1x8x8xf32>
    %244 = vector.shape_cast %236 : vector<8x8xf32> to vector<1x8x8xf32>
    %245 = tpu.concatenate %237, %238, %239, %240, %241, %242, %243, %244 in 0 : vector<1x8x8xf32>, vector<1x8x8xf32>, vector<1x8x8xf32>, vector<1x8x8xf32>, vector<1x8x8xf32>, vector<1x8x8xf32>, vector<1x8x8xf32>, vector<1x8x8xf32> -> vector<8x8x8xf32>
    %246 = arith.truncf %245 : vector<8x8x8xf32> to vector<8x8x8xbf16>
    %247 = vector.extract_strided_slice %226 {offsets = [0, 0], sizes = [8, 96], strides = [1, 1]} : vector<16x96xf32> to vector<8x96xf32>
    %248 = vector.extract_strided_slice %247 {offsets = [0, 32], sizes = [8, 8], strides = [1, 1]} : vector<8x96xf32> to vector<8x8xf32>
    %249 = vector.extract_strided_slice %247 {offsets = [0, 40], sizes = [8, 8], strides = [1, 1]} : vector<8x96xf32> to vector<8x8xf32>
    %250 = vector.extract_strided_slice %247 {offsets = [0, 48], sizes = [8, 8], strides = [1, 1]} : vector<8x96xf32> to vector<8x8xf32>
    %251 = vector.extract_strided_slice %247 {offsets = [0, 56], sizes = [8, 8], strides = [1, 1]} : vector<8x96xf32> to vector<8x8xf32>
    %252 = vector.extract_strided_slice %226 {offsets = [8, 0], sizes = [8, 96], strides = [1, 1]} : vector<16x96xf32> to vector<8x96xf32>
    %253 = vector.extract_strided_slice %252 {offsets = [0, 32], sizes = [8, 8], strides = [1, 1]} : vector<8x96xf32> to vector<8x8xf32>
    %254 = vector.extract_strided_slice %252 {offsets = [0, 40], sizes = [8, 8], strides = [1, 1]} : vector<8x96xf32> to vector<8x8xf32>
    %255 = vector.extract_strided_slice %252 {offsets = [0, 48], sizes = [8, 8], strides = [1, 1]} : vector<8x96xf32> to vector<8x8xf32>
    %256 = vector.extract_strided_slice %252 {offsets = [0, 56], sizes = [8, 8], strides = [1, 1]} : vector<8x96xf32> to vector<8x8xf32>
    %257 = vector.shape_cast %248 : vector<8x8xf32> to vector<1x8x8xf32>
    %258 = vector.shape_cast %249 : vector<8x8xf32> to vector<1x8x8xf32>
    %259 = vector.shape_cast %250 : vector<8x8xf32> to vector<1x8x8xf32>
    %260 = vector.shape_cast %251 : vector<8x8xf32> to vector<1x8x8xf32>
    %261 = vector.shape_cast %253 : vector<8x8xf32> to vector<1x8x8xf32>
    %262 = vector.shape_cast %254 : vector<8x8xf32> to vector<1x8x8xf32>
    %263 = vector.shape_cast %255 : vector<8x8xf32> to vector<1x8x8xf32>
    %264 = vector.shape_cast %256 : vector<8x8xf32> to vector<1x8x8xf32>
    %265 = tpu.concatenate %257, %258, %259, %260, %261, %262, %263, %264 in 0 : vector<1x8x8xf32>, vector<1x8x8xf32>, vector<1x8x8xf32>, vector<1x8x8xf32>, vector<1x8x8xf32>, vector<1x8x8xf32>, vector<1x8x8xf32>, vector<1x8x8xf32> -> vector<8x8x8xf32>
    %266 = arith.truncf %265 : vector<8x8x8xf32> to vector<8x8x8xbf16>
    %267 = vector.extract_strided_slice %226 {offsets = [0, 0], sizes = [8, 96], strides = [1, 1]} : vector<16x96xf32> to vector<8x96xf32>
    %268 = vector.extract_strided_slice %267 {offsets = [0, 64], sizes = [8, 8], strides = [1, 1]} : vector<8x96xf32> to vector<8x8xf32>
    %269 = vector.extract_strided_slice %267 {offsets = [0, 72], sizes = [8, 8], strides = [1, 1]} : vector<8x96xf32> to vector<8x8xf32>
    %270 = vector.extract_strided_slice %267 {offsets = [0, 80], sizes = [8, 8], strides = [1, 1]} : vector<8x96xf32> to vector<8x8xf32>
    %271 = vector.extract_strided_slice %267 {offsets = [0, 88], sizes = [8, 8], strides = [1, 1]} : vector<8x96xf32> to vector<8x8xf32>
    %272 = vector.extract_strided_slice %226 {offsets = [8, 0], sizes = [8, 96], strides = [1, 1]} : vector<16x96xf32> to vector<8x96xf32>
    %273 = vector.extract_strided_slice %272 {offsets = [0, 64], sizes = [8, 8], strides = [1, 1]} : vector<8x96xf32> to vector<8x8xf32>
    %274 = vector.extract_strided_slice %272 {offsets = [0, 72], sizes = [8, 8], strides = [1, 1]} : vector<8x96xf32> to vector<8x8xf32>
    %275 = vector.extract_strided_slice %272 {offsets = [0, 80], sizes = [8, 8], strides = [1, 1]} : vector<8x96xf32> to vector<8x8xf32>
    %276 = vector.extract_strided_slice %272 {offsets = [0, 88], sizes = [8, 8], strides = [1, 1]} : vector<8x96xf32> to vector<8x8xf32>
    %277 = vector.shape_cast %268 : vector<8x8xf32> to vector<1x8x8xf32>
    %278 = vector.shape_cast %269 : vector<8x8xf32> to vector<1x8x8xf32>
    %279 = vector.shape_cast %270 : vector<8x8xf32> to vector<1x8x8xf32>
    %280 = vector.shape_cast %271 : vector<8x8xf32> to vector<1x8x8xf32>
    %281 = vector.shape_cast %273 : vector<8x8xf32> to vector<1x8x8xf32>
    %282 = vector.shape_cast %274 : vector<8x8xf32> to vector<1x8x8xf32>
    %283 = vector.shape_cast %275 : vector<8x8xf32> to vector<1x8x8xf32>
    %284 = vector.shape_cast %276 : vector<8x8xf32> to vector<1x8x8xf32>
    %285 = tpu.concatenate %277, %278, %279, %280, %281, %282, %283, %284 in 0 : vector<1x8x8xf32>, vector<1x8x8xf32>, vector<1x8x8xf32>, vector<1x8x8xf32>, vector<1x8x8xf32>, vector<1x8x8xf32>, vector<1x8x8xf32>, vector<1x8x8xf32> -> vector<8x8x8xf32>
    %286 = arith.truncf %285 : vector<8x8x8xf32> to vector<8x8x8xbf16>
    "tpu.trace_start"() <{level = 10 : i32, message = "bqd,bkd->bqk"}> : () -> ()
    %cst_76 = arith.constant dense<0.000000e+00> : vector<8x8x8xf32>
    %287 = tpu.matmul %246, %266, %cst_76 {dimension_numbers = #tpu.dot_dimension_numbers<[2], [2], [1], [1], [0, 0, 0, 1, 1, 1], [0], [0]>} : vector<8x8x8xbf16>, vector<8x8x8xbf16>, vector<8x8x8xf32> -> vector<8x8x8xf32>
    "tpu.trace_stop"() : () -> ()
    %288 = vector.broadcast %0 : vector<8x1x8xf32> to vector<8x8x8xf32>
    %289 = arith.addf %287, %288 : vector<8x8x8xf32>
    %cst_77 = arith.constant dense<0xFF800000> : vector<8x8xf32>
    %290 = vector.multi_reduction <maximumf>, %289, %cst_77 [2] : vector<8x8x8xf32> to vector<8x8xf32>
    %291 = vector.shape_cast %290 : vector<8x8xf32> to vector<8x8x1xf32>
    %292 = vector.broadcast %291 : vector<8x8x1xf32> to vector<8x8x8xf32>
    %293 = arith.subf %289, %292 : vector<8x8x8xf32>
    %294 = math.exp %293 : vector<8x8x8xf32>
    %cst_78 = arith.constant dense<0.000000e+00> : vector<8x8xf32>
    %295 = vector.multi_reduction <add>, %294, %cst_78 [2] : vector<8x8x8xf32> to vector<8x8xf32>
    %296 = vector.shape_cast %295 : vector<8x8xf32> to vector<8x8x1xf32>
    %297 = tpu.reciprocal %296 {approx = true} : vector<8x8x1xf32> -> vector<8x8x1xf32>
    %298 = vector.broadcast %297 : vector<8x8x1xf32> to vector<8x8x8xf32>
    %299 = arith.mulf %294, %298 : vector<8x8x8xf32>
    %300 = arith.truncf %299 : vector<8x8x8xf32> to vector<8x8x8xbf16>
    "tpu.trace_start"() <{level = 10 : i32, message = "bqk,bkd->bqd"}> : () -> ()
    %cst_79 = arith.constant dense<0.000000e+00> : vector<8x8x8xf32>
    %301 = tpu.matmul %300, %286, %cst_79 {dimension_numbers = #tpu.dot_dimension_numbers<[2], [1], [1], [2], [0, 0, 0, 1, 1, 2], [0], [0]>} : vector<8x8x8xbf16>, vector<8x8x8xbf16>, vector<8x8x8xf32> -> vector<8x8x8xf32>
    "tpu.trace_stop"() : () -> ()
    %302 = vector.extract_strided_slice %301 {offsets = [0, 0, 0], sizes = [1, 8, 8], strides = [1, 1, 1]} : vector<8x8x8xf32> to vector<1x8x8xf32>
    %303 = vector.shape_cast %302 : vector<1x8x8xf32> to vector<8x8xf32>
    %304 = vector.extract_strided_slice %301 {offsets = [1, 0, 0], sizes = [1, 8, 8], strides = [1, 1, 1]} : vector<8x8x8xf32> to vector<1x8x8xf32>
    %305 = vector.shape_cast %304 : vector<1x8x8xf32> to vector<8x8xf32>
    %306 = vector.extract_strided_slice %301 {offsets = [2, 0, 0], sizes = [1, 8, 8], strides = [1, 1, 1]} : vector<8x8x8xf32> to vector<1x8x8xf32>
    %307 = vector.shape_cast %306 : vector<1x8x8xf32> to vector<8x8xf32>
    %308 = vector.extract_strided_slice %301 {offsets = [3, 0, 0], sizes = [1, 8, 8], strides = [1, 1, 1]} : vector<8x8x8xf32> to vector<1x8x8xf32>
    %309 = vector.shape_cast %308 : vector<1x8x8xf32> to vector<8x8xf32>
    %310 = tpu.concatenate %303, %305, %307, %309 in 1 : vector<8x8xf32>, vector<8x8xf32>, vector<8x8xf32>, vector<8x8xf32> -> vector<8x32xf32>
    %311 = vector.extract_strided_slice %301 {offsets = [4, 0, 0], sizes = [1, 8, 8], strides = [1, 1, 1]} : vector<8x8x8xf32> to vector<1x8x8xf32>
    %312 = vector.shape_cast %311 : vector<1x8x8xf32> to vector<8x8xf32>
    %313 = vector.extract_strided_slice %301 {offsets = [5, 0, 0], sizes = [1, 8, 8], strides = [1, 1, 1]} : vector<8x8x8xf32> to vector<1x8x8xf32>
    %314 = vector.shape_cast %313 : vector<1x8x8xf32> to vector<8x8xf32>
    %315 = vector.extract_strided_slice %301 {offsets = [6, 0, 0], sizes = [1, 8, 8], strides = [1, 1, 1]} : vector<8x8x8xf32> to vector<1x8x8xf32>
    %316 = vector.shape_cast %315 : vector<1x8x8xf32> to vector<8x8xf32>
    %317 = vector.extract_strided_slice %301 {offsets = [7, 0, 0], sizes = [1, 8, 8], strides = [1, 1, 1]} : vector<8x8x8xf32> to vector<1x8x8xf32>
    %318 = vector.shape_cast %317 : vector<1x8x8xf32> to vector<8x8xf32>
    %319 = tpu.concatenate %312, %314, %316, %318 in 1 : vector<8x8xf32>, vector<8x8xf32>, vector<8x8xf32>, vector<8x8xf32> -> vector<8x32xf32>
    %320 = tpu.concatenate %310, %319 in 0 : vector<8x32xf32>, vector<8x32xf32> -> vector<16x32xf32>
    %321 = arith.truncf %320 : vector<16x32xf32> to vector<16x32xbf16>
    %c1_80 = arith.constant 1 : index
    %c0_81 = arith.constant 0 : index
    %c0_82 = arith.constant 0 : index
    %322 = vector.load %arg7[%c1_80, %c0_81, %c0_82] : memref<2x32x32xbf16, #tpu.memory_space<vmem>>, vector<1x32x32xbf16>
    %323 = vector.shape_cast %322 : vector<1x32x32xbf16> to vector<32x32xbf16>
    %cst_83 = arith.constant dense<0.000000e+00> : vector<16x32xf32>
    %324 = tpu.matmul %321, %323, %cst_83 {dimension_numbers = #tpu.dot_dimension_numbers<[1], [0], [0], [1], [0, 0, 1, 1], [], []>} : vector<16x32xbf16>, vector<32x32xbf16>, vector<16x32xf32> -> vector<16x32xf32>
    %c1_84 = arith.constant 1 : index
    %c0_85 = arith.constant 0 : index
    %c0_86 = arith.constant 0 : index
    %325 = vector.load %arg8[%c1_84, %c0_85, %c0_86] : memref<2x1x32xf32, #tpu.memory_space<vmem>>, vector<1x1x32xf32>
    %326 = vector.shape_cast %325 : vector<1x1x32xf32> to vector<1x32xf32>
    %327 = vector.broadcast %326 : vector<1x32xf32> to vector<16x32xf32>
    %328 = arith.addf %324, %327 : vector<16x32xf32>
    %329 = arith.addf %328, %218 : vector<16x32xf32>
    %c1_87 = arith.constant 1 : index
    %c0_88 = arith.constant 0 : index
    %c0_89 = arith.constant 0 : index
    %330 = vector.load %arg9[%c1_87, %c0_88, %c0_89] : memref<2x1x32xf32, #tpu.memory_space<vmem>>, vector<1x1x32xf32>
    %331 = vector.shape_cast %330 : vector<1x1x32xf32> to vector<1x32xf32>
    %c1_90 = arith.constant 1 : index
    %c0_91 = arith.constant 0 : index
    %c0_92 = arith.constant 0 : index
    %332 = vector.load %arg10[%c1_90, %c0_91, %c0_92] : memref<2x1x32xf32, #tpu.memory_space<vmem>>, vector<1x1x32xf32>
    %333 = vector.shape_cast %332 : vector<1x1x32xf32> to vector<1x32xf32>
    %cst_93 = arith.constant dense<0.000000e+00> : vector<16xf32>
    %334 = vector.multi_reduction <add>, %329, %cst_93 [1] : vector<16x32xf32> to vector<16xf32>
    %335 = vector.shape_cast %334 : vector<16xf32> to vector<16x1xf32>
    %cst_94 = arith.constant 3.200000e+01 : f32
    %336 = vector.broadcast %cst_94 : f32 to vector<16x1xf32>
    %337 = arith.divf %335, %336 : vector<16x1xf32>
    %338 = vector.broadcast %337 : vector<16x1xf32> to vector<16x32xf32>
    %339 = arith.subf %329, %338 : vector<16x32xf32>
    %340 = arith.mulf %339, %339 : vector<16x32xf32>
    %cst_95 = arith.constant dense<0.000000e+00> : vector<16xf32>
    %341 = vector.multi_reduction <add>, %340, %cst_95 [1] : vector<16x32xf32> to vector<16xf32>
    %342 = vector.shape_cast %341 : vector<16xf32> to vector<16x1xf32>
    %cst_96 = arith.constant 3.200000e+01 : f32
    %343 = vector.broadcast %cst_96 : f32 to vector<16x1xf32>
    %344 = arith.divf %342, %343 : vector<16x1xf32>
    %345 = vector.broadcast %337 : vector<16x1xf32> to vector<16x32xf32>
    %346 = arith.subf %329, %345 : vector<16x32xf32>
    %cst_97 = arith.constant 9.99999996E-13 : f32
    %347 = vector.broadcast %cst_97 : f32 to vector<16x1xf32>
    %348 = arith.addf %344, %347 : vector<16x1xf32>
    %349 = math.rsqrt %348 : vector<16x1xf32>
    %350 = vector.broadcast %349 : vector<16x1xf32> to vector<16x32xf32>
    %351 = arith.mulf %346, %350 : vector<16x32xf32>
    %352 = vector.broadcast %331 : vector<1x32xf32> to vector<16x32xf32>
    %353 = arith.mulf %351, %352 : vector<16x32xf32>
    %354 = vector.broadcast %333 : vector<1x32xf32> to vector<16x32xf32>
    %355 = arith.addf %353, %354 : vector<16x32xf32>
    %356 = arith.truncf %355 : vector<16x32xf32> to vector<16x32xbf16>
    %c1_98 = arith.constant 1 : index
    %c0_99 = arith.constant 0 : index
    %c0_100 = arith.constant 0 : index
    %357 = vector.load %arg11[%c1_98, %c0_99, %c0_100] : memref<2x32x64xbf16, #tpu.memory_space<vmem>>, vector<1x32x64xbf16>
    %358 = vector.shape_cast %357 : vector<1x32x64xbf16> to vector<32x64xbf16>
    %cst_101 = arith.constant dense<0.000000e+00> : vector<16x64xf32>
    %359 = tpu.matmul %356, %358, %cst_101 {dimension_numbers = #tpu.dot_dimension_numbers<[1], [0], [0], [1], [0, 0, 1, 1], [], []>} : vector<16x32xbf16>, vector<32x64xbf16>, vector<16x64xf32> -> vector<16x64xf32>
    %c1_102 = arith.constant 1 : index
    %c0_103 = arith.constant 0 : index
    %c0_104 = arith.constant 0 : index
    %360 = vector.load %arg12[%c1_102, %c0_103, %c0_104] : memref<2x1x64xf32, #tpu.memory_space<vmem>>, vector<1x1x64xf32>
    %361 = vector.shape_cast %360 : vector<1x1x64xf32> to vector<1x64xf32>
    %362 = vector.broadcast %361 : vector<1x64xf32> to vector<16x64xf32>
    %363 = arith.addf %359, %362 : vector<16x64xf32>
    %cst_105 = arith.constant 5.000000e-01 : f32
    %364 = vector.broadcast %cst_105 : f32 to vector<16x64xf32>
    %365 = arith.mulf %364, %363 : vector<16x64xf32>
    %cst_106 = arith.constant 4.471500e-02 : f32
    %366 = vector.broadcast %cst_106 : f32 to vector<16x64xf32>
    %367 = arith.mulf %366, %363 : vector<16x64xf32>
    %368 = arith.mulf %367, %363 : vector<16x64xf32>
    %369 = arith.mulf %368, %363 : vector<16x64xf32>
    %370 = arith.addf %363, %369 : vector<16x64xf32>
    %cst_107 = arith.constant 0.797884583 : f32
    %371 = vector.broadcast %cst_107 : f32 to vector<16x64xf32>
    %372 = arith.mulf %371, %370 : vector<16x64xf32>
    %373 = math.tanh %372 : vector<16x64xf32>
    %cst_108 = arith.constant 1.000000e+00 : f32
    %374 = vector.broadcast %cst_108 : f32 to vector<16x64xf32>
    %375 = arith.addf %374, %373 : vector<16x64xf32>
    %376 = arith.mulf %365, %375 : vector<16x64xf32>
    %377 = arith.truncf %376 : vector<16x64xf32> to vector<16x64xbf16>
    %c1_109 = arith.constant 1 : index
    %c0_110 = arith.constant 0 : index
    %c0_111 = arith.constant 0 : index
    %378 = vector.load %arg13[%c1_109, %c0_110, %c0_111] : memref<2x64x32xbf16, #tpu.memory_space<vmem>>, vector<1x64x32xbf16>
    %379 = vector.shape_cast %378 : vector<1x64x32xbf16> to vector<64x32xbf16>
    %cst_112 = arith.constant dense<0.000000e+00> : vector<16x32xf32>
    %380 = tpu.matmul %377, %379, %cst_112 {dimension_numbers = #tpu.dot_dimension_numbers<[1], [0], [0], [1], [0, 0, 1, 1], [], []>} : vector<16x64xbf16>, vector<64x32xbf16>, vector<16x32xf32> -> vector<16x32xf32>
    %c1_113 = arith.constant 1 : index
    %c0_114 = arith.constant 0 : index
    %c0_115 = arith.constant 0 : index
    %381 = vector.load %arg14[%c1_113, %c0_114, %c0_115] : memref<2x1x32xf32, #tpu.memory_space<vmem>>, vector<1x1x32xf32>
    %382 = vector.shape_cast %381 : vector<1x1x32xf32> to vector<1x32xf32>
    %383 = vector.broadcast %382 : vector<1x32xf32> to vector<16x32xf32>
    %384 = arith.addf %380, %383 : vector<16x32xf32>
    %385 = arith.addf %384, %355 : vector<16x32xf32>
    %c1_116 = arith.constant 1 : index
    %c0_117 = arith.constant 0 : index
    %c0_118 = arith.constant 0 : index
    %386 = vector.load %arg15[%c1_116, %c0_117, %c0_118] : memref<2x1x32xf32, #tpu.memory_space<vmem>>, vector<1x1x32xf32>
    %387 = vector.shape_cast %386 : vector<1x1x32xf32> to vector<1x32xf32>
    %c1_119 = arith.constant 1 : index
    %c0_120 = arith.constant 0 : index
    %c0_121 = arith.constant 0 : index
    %388 = vector.load %arg16[%c1_119, %c0_120, %c0_121] : memref<2x1x32xf32, #tpu.memory_space<vmem>>, vector<1x1x32xf32>
    %389 = vector.shape_cast %388 : vector<1x1x32xf32> to vector<1x32xf32>
    %cst_122 = arith.constant dense<0.000000e+00> : vector<16xf32>
    %390 = vector.multi_reduction <add>, %385, %cst_122 [1] : vector<16x32xf32> to vector<16xf32>
    %391 = vector.shape_cast %390 : vector<16xf32> to vector<16x1xf32>
    %cst_123 = arith.constant 3.200000e+01 : f32
    %392 = vector.broadcast %cst_123 : f32 to vector<16x1xf32>
    %393 = arith.divf %391, %392 : vector<16x1xf32>
    %394 = vector.broadcast %393 : vector<16x1xf32> to vector<16x32xf32>
    %395 = arith.subf %385, %394 : vector<16x32xf32>
    %396 = arith.mulf %395, %395 : vector<16x32xf32>
    %cst_124 = arith.constant dense<0.000000e+00> : vector<16xf32>
    %397 = vector.multi_reduction <add>, %396, %cst_124 [1] : vector<16x32xf32> to vector<16xf32>
    %398 = vector.shape_cast %397 : vector<16xf32> to vector<16x1xf32>
    %cst_125 = arith.constant 3.200000e+01 : f32
    %399 = vector.broadcast %cst_125 : f32 to vector<16x1xf32>
    %400 = arith.divf %398, %399 : vector<16x1xf32>
    %401 = vector.broadcast %393 : vector<16x1xf32> to vector<16x32xf32>
    %402 = arith.subf %385, %401 : vector<16x32xf32>
    %cst_126 = arith.constant 9.99999996E-13 : f32
    %403 = vector.broadcast %cst_126 : f32 to vector<16x1xf32>
    %404 = arith.addf %400, %403 : vector<16x1xf32>
    %405 = math.rsqrt %404 : vector<16x1xf32>
    %406 = vector.broadcast %405 : vector<16x1xf32> to vector<16x32xf32>
    %407 = arith.mulf %402, %406 : vector<16x32xf32>
    %408 = vector.broadcast %387 : vector<1x32xf32> to vector<16x32xf32>
    %409 = arith.mulf %407, %408 : vector<16x32xf32>
    %410 = vector.broadcast %389 : vector<1x32xf32> to vector<16x32xf32>
    %411 = arith.addf %409, %410 : vector<16x32xf32>
    %412 = vector.extract_strided_slice %411 {offsets = [0, 0], sizes = [1, 32], strides = [1, 1]} : vector<16x32xf32> to vector<1x32xf32>
    %413 = vector.extract_strided_slice %411 {offsets = [8, 0], sizes = [1, 32], strides = [1, 1]} : vector<16x32xf32> to vector<1x32xf32>
    %414 = tpu.concatenate %412, %413 in 0 : vector<1x32xf32>, vector<1x32xf32> -> vector<2x32xf32>
    %415 = arith.truncf %414 : vector<2x32xf32> to vector<2x32xbf16>
    %c0_127 = arith.constant 0 : index
    %c0_128 = arith.constant 0 : index
    %416 = vector.load %arg17[%c0_127, %c0_128] : memref<32x32xbf16, #tpu.memory_space<vmem>>, vector<32x32xbf16>
    %cst_129 = arith.constant dense<0.000000e+00> : vector<2x32xf32>
    %417 = tpu.matmul %415, %416, %cst_129 {dimension_numbers = #tpu.dot_dimension_numbers<[1], [0], [0], [1], [0, 0, 1, 1], [], []>} : vector<2x32xbf16>, vector<32x32xbf16>, vector<2x32xf32> -> vector<2x32xf32>
    %c0_130 = arith.constant 0 : index
    %c0_131 = arith.constant 0 : index
    %418 = vector.load %arg18[%c0_130, %c0_131] : memref<1x32xf32, #tpu.memory_space<vmem>>, vector<1x32xf32>
    %419 = vector.broadcast %418 : vector<1x32xf32> to vector<2x32xf32>
    %420 = arith.addf %417, %419 : vector<2x32xf32>
    %421 = math.tanh %420 : vector<2x32xf32>
    %422 = arith.truncf %421 : vector<2x32xf32> to vector<2x32xbf16>
    %c0_132 = arith.constant 0 : index
    %c0_133 = arith.constant 0 : index
    %423 = vector.load %arg19[%c0_132, %c0_133] : memref<32x28xbf16, #tpu.memory_space<vmem>>, vector<32x28xbf16>
    %cst_134 = arith.constant dense<0.000000e+00> : vector<2x28xf32>
    %424 = tpu.matmul %422, %423, %cst_134 {dimension_numbers = #tpu.dot_dimension_numbers<[1], [0], [0], [1], [0, 0, 1, 1], [], []>} : vector<2x32xbf16>, vector<32x28xbf16>, vector<2x28xf32> -> vector<2x28xf32>
    %c0_135 = arith.constant 0 : index
    %c0_136 = arith.constant 0 : index
    %425 = vector.load %arg20[%c0_135, %c0_136] : memref<1x28xf32, #tpu.memory_space<vmem>>, vector<1x28xf32>
    %426 = vector.broadcast %425 : vector<1x28xf32> to vector<2x28xf32>
    %427 = arith.addf %424, %426 : vector<2x28xf32>
    %428 = arith.negf %427 : vector<2x28xf32>
    %429 = math.exp %428 : vector<2x28xf32>
    %cst_137 = arith.constant 1.000000e+00 : f32
    %430 = vector.broadcast %cst_137 : f32 to vector<2x28xf32>
    %431 = arith.addf %430, %429 : vector<2x28xf32>
    %432 = arith.divf %430, %431 : vector<2x28xf32>
    %c0_138 = arith.constant 0 : index
    %c0_139 = arith.constant 0 : index
    %433 = vector.load %arg21[%c0_138, %c0_139] : memref<2x28xf32, #tpu.memory_space<vmem>>, vector<2x28xf32>
    tpu.vector_store %arg21[%c0_138, %c0_139], %432 {strides = array<i32>} : memref<2x28xf32, #tpu.memory_space<vmem>>, vector<2x28xf32>,
    return
  }
  func.func @transform_0(%arg0: i32) -> (i32, i32) {
    %c0_i32 = arith.constant 0 : i32
    %c0_i32_0 = arith.constant 0 : i32
    %c0_i32_1 = arith.constant 0 : i32
    return %c0_i32, %c0_i32_0 : i32, i32
  }
  func.func @transform_1(%arg0: i32) -> (i32, i32, i32) {
    %c0_i32 = arith.constant 0 : i32
    %c0_i32_0 = arith.constant 0 : i32
    %c0_i32_1 = arith.constant 0 : i32
    %c0_i32_2 = arith.constant 0 : i32
    return %c0_i32, %c0_i32_0, %c0_i32_1 : i32, i32, i32
  }
  func.func @transform_2(%arg0: i32) -> (i32, i32) {
    %c0_i32 = arith.constant 0 : i32
    %c0_i32_0 = arith.constant 0 : i32
    %c0_i32_1 = arith.constant 0 : i32
    return %c0_i32, %c0_i32_0 : i32, i32
  }
  func.func @transform_3(%arg0: i32) -> (i32, i32) {
    %c0_i32 = arith.constant 0 : i32
    %c0_i32_0 = arith.constant 0 : i32
    %c0_i32_1 = arith.constant 0 : i32
    return %c0_i32, %c0_i32_0 : i32, i32
  }
  func.func @transform_4(%arg0: i32) -> (i32, i32, i32) {
    %c0_i32 = arith.constant 0 : i32
    %c0_i32_0 = arith.constant 0 : i32
    %c0_i32_1 = arith.constant 0 : i32
    %c0_i32_2 = arith.constant 0 : i32
    return %c0_i32, %c0_i32_0, %c0_i32_1 : i32, i32, i32
  }
  func.func @transform_5(%arg0: i32) -> (i32, i32, i32) {
    %c0_i32 = arith.constant 0 : i32
    %c0_i32_0 = arith.constant 0 : i32
    %c0_i32_1 = arith.constant 0 : i32
    %c0_i32_2 = arith.constant 0 : i32
    return %c0_i32, %c0_i32_0, %c0_i32_1 : i32, i32, i32
  }
  func.func @transform_6(%arg0: i32) -> (i32, i32, i32) {
    %c0_i32 = arith.constant 0 : i32
    %c0_i32_0 = arith.constant 0 : i32
    %c0_i32_1 = arith.constant 0 : i32
    %c0_i32_2 = arith.constant 0 : i32
    return %c0_i32, %c0_i32_0, %c0_i32_1 : i32, i32, i32
  }
  func.func @transform_7(%arg0: i32) -> (i32, i32, i32) {
    %c0_i32 = arith.constant 0 : i32
    %c0_i32_0 = arith.constant 0 : i32
    %c0_i32_1 = arith.constant 0 : i32
    %c0_i32_2 = arith.constant 0 : i32
    return %c0_i32, %c0_i32_0, %c0_i32_1 : i32, i32, i32
  }
  func.func @transform_8(%arg0: i32) -> (i32, i32, i32) {
    %c0_i32 = arith.constant 0 : i32
    %c0_i32_0 = arith.constant 0 : i32
    %c0_i32_1 = arith.constant 0 : i32
    %c0_i32_2 = arith.constant 0 : i32
    return %c0_i32, %c0_i32_0, %c0_i32_1 : i32, i32, i32
  }
  func.func @transform_9(%arg0: i32) -> (i32, i32, i32) {
    %c0_i32 = arith.constant 0 : i32
    %c0_i32_0 = arith.constant 0 : i32
    %c0_i32_1 = arith.constant 0 : i32
    %c0_i32_2 = arith.constant 0 : i32
    return %c0_i32, %c0_i32_0, %c0_i32_1 : i32, i32, i32
  }
  func.func @transform_10(%arg0: i32) -> (i32, i32, i32) {
    %c0_i32 = arith.constant 0 : i32
    %c0_i32_0 = arith.constant 0 : i32
    %c0_i32_1 = arith.constant 0 : i32
    %c0_i32_2 = arith.constant 0 : i32
    return %c0_i32, %c0_i32_0, %c0_i32_1 : i32, i32, i32
  }
  func.func @transform_11(%arg0: i32) -> (i32, i32, i32) {
    %c0_i32 = arith.constant 0 : i32
    %c0_i32_0 = arith.constant 0 : i32
    %c0_i32_1 = arith.constant 0 : i32
    %c0_i32_2 = arith.constant 0 : i32
    return %c0_i32, %c0_i32_0, %c0_i32_1 : i32, i32, i32
  }
  func.func @transform_12(%arg0: i32) -> (i32, i32, i32) {
    %c0_i32 = arith.constant 0 : i32
    %c0_i32_0 = arith.constant 0 : i32
    %c0_i32_1 = arith.constant 0 : i32
    %c0_i32_2 = arith.constant 0 : i32
    return %c0_i32, %c0_i32_0, %c0_i32_1 : i32, i32, i32
  }
  func.func @transform_13(%arg0: i32) -> (i32, i32, i32) {
    %c0_i32 = arith.constant 0 : i32
    %c0_i32_0 = arith.constant 0 : i32
    %c0_i32_1 = arith.constant 0 : i32
    %c0_i32_2 = arith.constant 0 : i32
    return %c0_i32, %c0_i32_0, %c0_i32_1 : i32, i32, i32
  }
  func.func @transform_14(%arg0: i32) -> (i32, i32, i32) {
    %c0_i32 = arith.constant 0 : i32
    %c0_i32_0 = arith.constant 0 : i32
    %c0_i32_1 = arith.constant 0 : i32
    %c0_i32_2 = arith.constant 0 : i32
    return %c0_i32, %c0_i32_0, %c0_i32_1 : i32, i32, i32
  }
  func.func @transform_15(%arg0: i32) -> (i32, i32, i32) {
    %c0_i32 = arith.constant 0 : i32
    %c0_i32_0 = arith.constant 0 : i32
    %c0_i32_1 = arith.constant 0 : i32
    %c0_i32_2 = arith.constant 0 : i32
    return %c0_i32, %c0_i32_0, %c0_i32_1 : i32, i32, i32
  }
  func.func @transform_16(%arg0: i32) -> (i32, i32) {
    %c0_i32 = arith.constant 0 : i32
    %c0_i32_0 = arith.constant 0 : i32
    %c0_i32_1 = arith.constant 0 : i32
    return %c0_i32, %c0_i32_0 : i32, i32
  }
  func.func @transform_17(%arg0: i32) -> (i32, i32) {
    %c0_i32 = arith.constant 0 : i32
    %c0_i32_0 = arith.constant 0 : i32
    %c0_i32_1 = arith.constant 0 : i32
    return %c0_i32, %c0_i32_0 : i32, i32
  }
  func.func @transform_18(%arg0: i32) -> (i32, i32) {
    %c0_i32 = arith.constant 0 : i32
    %c0_i32_0 = arith.constant 0 : i32
    %c0_i32_1 = arith.constant 0 : i32
    return %c0_i32, %c0_i32_0 : i32, i32
  }
  func.func @transform_19(%arg0: i32) -> (i32, i32) {
    %c0_i32 = arith.constant 0 : i32
    %c0_i32_0 = arith.constant 0 : i32
    %c0_i32_1 = arith.constant 0 : i32
    return %c0_i32, %c0_i32_0 : i32, i32
  }
  func.func @transform_20(%arg0: i32) -> (i32, i32) {
    %c0_i32 = arith.constant 0 : i32
    %c0_i32_0 = arith.constant 0 : i32
    %c0_i32_1 = arith.constant 0 : i32
    return %c0_i32, %c0_i32_0 : i32, i32
  }
}

</mosaic_0001>

<bundles_post_ra>
// kernel: bert_for_multilabel.1
= control target key start
LH: loop header
LB: loop body
LE: loop exit
PB: predicated region body
PF: predicated region fallthrough
CT: control target
= control target key end

     0   :  { %s4543_s0 = inlined_call_operand.vmem [shape: f32[16,32], index: 0, kind: input, shape index: {}]   ;;  %s4544_s1 = inlined_call_operand.vmem [shape: f32[8,1,8], index: 1, kind: input, shape index: {}]   ;;  %s4545_s2 = inlined_call_operand.vmem [shape: f32[1,32], index: 2, kind: input, shape index: {}]   ;;  %s4546_s3 = inlined_call_operand.vmem [shape: f32[1,32], index: 3, kind: input, shape index: {}]   ;;  %s4547_s4 = inlined_call_operand.vmem [shape: bf16[2,32,96], index: 4, kind: input, shape index: {}]   ;;  %s4548_s5 = inlined_call_operand.vmem [shape: f32[2,1,96], index: 5, kind: input, shape index: {}]   ;;  %s4549_s6 = inlined_call_operand.vmem [shape: bf16[2,32,32], index: 6, kind: input, shape index: {}]   ;;  %s4550_s7 = inlined_call_operand.vmem [shape: f32[2,1,32], index: 7, kind: input, shape index: {}]   ;;  %s4551_s8 = inlined_call_operand.vmem [shape: f32[2,1,32], index: 8, kind: input, shape index: {}]   ;;  %s4552_s9 = inlined_call_operand.vmem [shape: f32[2,1,32], index: 9, kind: input, shape index: {}]   ;;  %s4553_s10 = inlined_call_operand.vmem [shape: bf16[2,32,64], index: 10, kind: input, shape index: {}]   ;;  %s4554_s11 = inlined_call_operand.vmem [shape: f32[2,1,64], index: 11, kind: input, shape index: {}]   ;;  %s4555_s12 = inlined_call_operand.vmem [shape: bf16[2,64,32], index: 12, kind: input, shape index: {}]   ;;  %s4556_s13 = inlined_call_operand.vmem [shape: f32[2,1,32], index: 13, kind: input, shape index: {}]   ;;  %s4557_s14 = inlined_call_operand.vmem [shape: f32[2,1,32], index: 14, kind: input, shape index: {}]   ;;  %s4558_s15 = inlined_call_operand.vmem [shape: f32[2,1,32], index: 15, kind: input, shape index: {}]   ;;  %s4559_s16 = inlined_call_operand.vmem [shape: bf16[32,32], index: 16, kind: input, shape index: {}]   ;;  %s4560_s17 = inlined_call_operand.vmem [shape: f32[1,32], index: 17, kind: input, shape index: {}]   ;;  %s4561_s18 = inlined_call_operand.vmem [shape: bf16[32,28], index: 18, kind: input, shape index: {}]   ;;  %s4562_s19 = inlined_call_operand.vmem [shape: f32[1,28], index: 19, kind: input, shape index: {}]   ;;  %s4563_s20 = inlined_call_operand.hbm [shape: f32[2,28], index: 20, kind: output, shape index: {}]  }
   0x1   :  { %4570 = sst [smem:[#allocation5_spill]] %s4543_s0 }
   0x2   :  { %4571 = sst [smem:[#allocation6_spill]] %s4544_s1 }
   0x3   :  { %4572 = sst [smem:[#allocation7_spill]] %s4545_s2 }
   0x4   :  { %4573 = sst [smem:[#allocation8_spill]] %s4546_s3 }
   0x5   :  { %4574 = sst [smem:[#allocation9_spill]] %s4547_s4 }
   0x6   :  { %s4575_s23 = sld [smem:[#allocation5_spill]]  ;;  %vm79_vm0 = vcmask 261120  }
   0xc   :  { %v75_v0 = vld [vmem:[%s4575_s23] sm:$0xff]  ;;  %v76_v1 = vld [vmem:[%s4575_s23 + $0x8] sm:$0xff] }
   0xd   :  { %v80_v2 = vsel %vm79_vm0, %v75_v0, 0.0  ;;  %v83_v3 = vsel %vm79_vm0, %v76_v1, 0.0 }
   0xe   :  { %81 = vadd.xlane.f32.xlu0 %v80_v2 }
  0x12   :  { %84 = vadd.xlane.f32.xlu0 %v83_v3 }
  0x13   :  { %25 = vsyncpa [#allocation3], 0  ;;  %s4576_s26 = sld [smem:[#allocation9_spill]]  ;;  %v3701_v15 = vmov 0.0   ;;  %vm3702_vm1 = vmmov 0   ;;  %s4577_s30 = sld [smem:[#allocation7_spill]] }
  0x14   :  { %3227 = vmatprep.subr.bf16.mxu0 %v3701_v15  ;;  %3231 = vmatprep.mubr.msk.bf16.mxu0 %vm3702_vm1, %v3701_v15  ;;  %s4578_s1 = sld [smem:[#allocation8_spill]]  ;;  %v3008_v34 = vld [vmem:[%s4548_s5] ss:$0 sm:$0xff]  ;;  %s3703_s24 = smov 112   ;;  %vm270_vm2 = vcmask 64512   ;;  %vm761_vm3 = vcmask 1043456  }
  0x15   :  { %3235 = vmatprep.subr.bf16.mxu1 %v3701_v15  ;;  %3237 = vmatprep.mubr.msk.bf16.mxu1 %vm3702_vm1, %v3701_v15  ;;  %s3704_s2 = smov 120   ;;  %s3705_s25 = smov 104   ;;  %vm1154_vm4 = vcmask 130048   ;;  %vm1156_vm5 = vcmask 195584   ;;  %vm1413_vm6 = vcmask 523264   ;;  %vm2847_vm7 = vcmask 1040384  }
  0x16   :  { %s3706_s3 = smov 96   ;;  %s4579_s4 = sld [smem:[#allocation6_spill]]  ;;  %vm2990_vm8 = vcmask 222208  }
  0x17   :  { %s3707_s21 = smov 64   ;;  %s4568_s28 = smov 8  }
  0x18   :  { %s4569_s29 = smov 16  }
  0x19   :  { %v3548_v14 = vld [vmem:[%s4576_s26] sm:$0xff]   ;;  %v3549_v16 = vld [vmem:[%s4576_s26 + $0x8] sm:$0xff]  }
  0x1a   :  { %3228 = vmatpush3.bf16.msra.mxu0 %v3548_v14  ;;  %v3006_v25 = vld [vmem:[%s4577_s30] ss:$0 sm:$0xff] }
  0x1b   :  { %3229 = vmatprep.subr.bf16.mxu0 %v3701_v15  ;;  %v3007_v29 = vld [vmem:[%s4578_s1] ss:$0 sm:$0xff]  ;;  %s4567_s1 = smov 24  }
  0x1c   :  { %v3013_v14 = vld [vmem:[%s4579_s4 + $0x1] ss:$0 sm:$0xff] }
  0x1e   :  { %3230 = vmatpush3.bf16.msra.mxu0 %v3549_v16  ;;  %v3014_v16 = vld [vmem:[%s4579_s4 + $0x2] ss:$0 sm:$0xff] }
  0x1f   :  { %3241 = vmatprep.subr.bf16.mxu0 %v3701_v15 }
  0x9b   :  { %v82_v4 = vpop.xlane.xlu0 %81 }
  0x9c   :  { %v87_v5 = vmul.f32 0.03125, %v82_v4 }
  0x9e   :  { %v89_v6 = vsub.f32 %v75_v0, %v87_v5 }
  0x9f   :  { %v85_v7 = vpop.xlane.xlu0 %84 }
  0xa0   :  { %v88_v8 = vmul.f32 0.03125, %v85_v7  ;;  %v91_v9 = vmul.f32 %v89_v6, %v89_v6  ;;  %v3012_v7 = vld [vmem:[%s4579_s4] ss:$0 sm:$0xff] }
  0xa2   :  { %v90_v10 = vsub.f32 %v76_v1, %v88_v8  ;;  %v93_v11 = vsel %vm79_vm0, %v91_v9, 0.0 }
  0xa3   :  { %94 = vadd.xlane.f32.xlu1 %v93_v11 }
  0xa4   :  { %v92_v12 = vmul.f32 %v90_v10, %v90_v10 }
  0xa6   :  { %v96_v13 = vsel %vm79_vm0, %v92_v12, 0.0 }
  0xa7   :  { %97 = vadd.xlane.f32.xlu1 %v96_v13 }
 0x130   :  { %v95_v17 = vpop.xlane.xlu1 %94 }
 0x131   :  { %v99_v18 = vmul.f32 0.03125, %v95_v17 }
 0x133   :  { %v101_v19 = vadd.f32 1e-12, %v99_v18 }
 0x134   :  { %v98_v20 = vpop.xlane.xlu1 %97 }
 0x135   :  { %3572 = vrsqrt.f32 %v101_v19  ;;  %v100_v21 = vmul.f32 0.03125, %v98_v20 }
 0x137   :  { %v102_v22 = vadd.f32 1e-12, %v100_v21 }
 0x139   :  { %3574 = vrsqrt.f32 %v102_v22 }
 0x13f   :  { %v3573_v23 = vpop.eup %3572 }
 0x140   :  { %v105_v24 = vmul.f32 %v3573_v23, %v89_v6 }
 0x142   :  { %v113_v28 = vmul.f32 %v3006_v25, %v105_v24 }
 0x143   :  { %v3575_v26 = vpop.eup %3574 }
 0x144   :  { %v106_v27 = vmul.f32 %v3575_v26, %v90_v10  ;;  %v3847_v31 = vadd.f32 %v3007_v29, %v113_v28 }
 0x146   :  { %v114_v30 = vmul.f32 %v3006_v25, %v106_v27 }
 0x148   :  { %v3849_v32 = vadd.f32 %v3007_v29, %v114_v30  ;;  %v3015_v29 = vld [vmem:[%s4579_s4 + $0x3] ss:$0 sm:$0xff] }
 0x14a   :  { %v123_v33 = vpack.c.bf16 %v3849_v32, %v3847_v31 }
 0x14c   :  { %3232 = vmatmul.mubr.msk.bf16.vlgmr.msra.gmra.mrb[0].mxu0 %vm79_vm0, %v123_v33  ;;  %v3016_v33 = vld [vmem:[%s4579_s4 + $0x4] ss:$0 sm:$0xff] }
 0x14d   :  { %3243 = vmatprep.mubr.msk.bf16.mxu0 %vm3702_vm1, %v3701_v15 }
 0x21f   :  { %v184_v35 = vpop.f32.mrb[0].mxu0 }
 0x220   :  { %v185_v36 = vadd.f32 %v3008_v34, %v184_v35  ;;  %v3233_v37 = vpop.f32.mrb[1].mxu0 }
 0x221   :  { %v187_v38 = vpop.f32.mrb[2].mxu0 }
 0x222   :  { %195 = vrot.lane.b32.xlu1 %v185_v36, %s3703_s24  ;;  %192 = vrot.lane.b32.xlu0 %v185_v36, %s3704_s2  ;;  %v3234_v39 = vpop.f32.mrb[3].mxu0  ;;  %v188_v40 = vadd.f32 %v3008_v34, %v187_v38  ;;  %v3863_v41 = vpack.c.bf16 %v185_v36, %v185_v36 }
 0x224   :  { %v3879_v49 = vpack.c.bf16 %v188_v40, %v188_v40 }
 0x226   :  { %198 = vrot.lane.b32.xlu1 %v185_v36, %s3705_s25  ;;  %205 = vrot.lane.b32.xlu0 %v188_v40, %s3703_s24 }
 0x22a   :  { %268 = vrot.lane.b32.xlu0 %v3863_v41, %s3706_s3  ;;  %202 = vrot.lane.b32.xlu1 %v188_v40, %s3704_s2 }
 0x22e   :  { %208 = vrot.lane.b32.xlu1 %v188_v40, %s3705_s25 }
 0x294   :  { %v196_v42 = vpop.permute.xlu1 %195  ;;  %v193_v43 = vpop.permute.xlu0 %192 }
 0x295   :  { %v3869_v44 = vpack.c.bf16 %v196_v42, %v196_v42  ;;  %v3871_v45 = vpack.c.bf16 %v193_v43, %v193_v43 }
 0x297   :  { %367 = vrot.lane.b32.xlu0 %v3869_v44, %s3706_s3  ;;  %318 = vrot.lane.b32.xlu1 %v3871_v45, %s3706_s3 }
 0x298   :  { %v199_v46 = vpop.permute.xlu1 %198  ;;  %v206_v47 = vpop.permute.xlu0 %205 }
 0x299   :  { %v3877_v48 = vpack.c.bf16 %v199_v46, %v199_v46  ;;  %v3885_v52 = vpack.c.bf16 %v206_v47, %v206_v47  ;;  %v3017_v47 = vld [vmem:[%s4579_s4 + $0x5] ss:$0 sm:$0xff] }
 0x29b   :  { %416 = vrot.lane.b32.xlu1 %v3877_v48, %s3706_s3  ;;  %465 = vrot.lane.b32.xlu0 %v3879_v49, %s3706_s3 }
 0x29c   :  { %v269_v50 = vpop.permute.xlu0 %268  ;;  %v203_v51 = vpop.permute.xlu1 %202 }
 0x29d   :  { %v3887_v53 = vpack.c.bf16 %v203_v51, %v203_v51  ;;  %v275_v54 = vsel %vm270_vm2, %v269_v50, 0  ;;  %v3018_v50 = vld [vmem:[%s4579_s4 + $0x6] ss:$0 sm:$0xff] }
 0x29e   :  { %3236 = vmatpush3.bf16.xpose.msra.mxu1 %v275_v54 }
 0x29f   :  { %514 = vrot.lane.b32.xlu1 %v3887_v53, %s3706_s3  ;;  %563 = vrot.lane.b32.xlu0 %v3885_v52, %s3706_s3 }
 0x2a0   :  { %v209_v55 = vpop.permute.xlu1 %208  ;;  %3247 = vmatprep.subr.bf16.mxu1 %v3701_v15 }
 0x2a1   :  { %v3895_v56 = vpack.c.bf16 %v209_v55, %v209_v55 }
 0x2a3   :  { %612 = vrot.lane.b32.xlu1 %v3895_v56, %s3706_s3 }
 0x2a5   :  { %3238 = vmatmul.mubr.msk.bf16.vlgmr.msra.gmra.mrb[0].mxu1 %vm270_vm2, %v3863_v41 }
 0x2a6   :  { %3249 = vmatprep.mubr.msk.bf16.mxu1 %vm3702_vm1, %v3701_v15 }
 0x309   :  { %v368_v57 = vpop.permute.xlu0 %367  ;;  %v319_v58 = vpop.permute.xlu1 %318 }
 0x30a   :  { %v373_v59 = vsel %vm270_vm2, %v368_v57, 0  ;;  %v324_v60 = vsel %vm270_vm2, %v319_v58, 0 }
 0x30b   :  { %3242 = vmatpush3.bf16.xpose.msra.mxu0 %v324_v60  ;;  %3248 = vmatpush3.bf16.xpose.msra.mxu1 %v373_v59 }
 0x30c   :  { %3253 = vmatprep.subr.bf16.mxu0 %v3701_v15  ;;  %3259 = vmatprep.subr.bf16.mxu1 %v3701_v15 }
 0x30d   :  { %v417_v61 = vpop.permute.xlu1 %416  ;;  %v466_v62 = vpop.permute.xlu0 %465 }
 0x30e   :  { %v422_v63 = vsel %vm270_vm2, %v417_v61, 0  ;;  %v471_v0 = vsel %vm270_vm2, %v466_v62, 0 }
 0x311   :  { %v515_v1 = vpop.permute.xlu1 %514  ;;  %v564_v2 = vpop.permute.xlu0 %563 }
 0x312   :  { %3244 = vmatmul.mubr.msk.bf16.vlgmr.msra.gmra.mrb[4].mxu0 %vm270_vm2, %v3871_v45  ;;  %3250 = vmatmul.mubr.msk.bf16.vlgmr.msra.gmra.mrb[4].mxu1 %vm270_vm2, %v3869_v44  ;;  %v520_v3 = vsel %vm270_vm2, %v515_v1, 0  ;;  %v569_v4 = vsel %vm270_vm2, %v564_v2, 0 }
 0x313   :  { %3254 = vmatpush3.bf16.xpose.msra.mxu0 %v422_v63  ;;  %3260 = vmatpush3.bf16.xpose.msra.mxu1 %v471_v0 }
 0x314   :  { %3255 = vmatprep.mubr.msk.bf16.mxu0 %vm3702_vm1, %v3701_v15  ;;  %3261 = vmatprep.mubr.msk.bf16.mxu1 %vm3702_vm1, %v3701_v15 }
 0x315   :  { %3265 = vmatprep.subr.bf16.mxu0 %v3701_v15  ;;  %3271 = vmatprep.subr.bf16.mxu1 %v3701_v15  ;;  %v613_v5 = vpop.permute.xlu1 %612 }
 0x316   :  { %v618_v6 = vsel %vm270_vm2, %v613_v5, 0 }
 0x31a   :  { %3256 = vmatmul.mubr.msk.bf16.vlgmr.msra.gmra.mrb[8].mxu0 %vm270_vm2, %v3877_v48  ;;  %3262 = vmatmul.mubr.msk.bf16.vlgmr.msra.gmra.mrb[8].mxu1 %vm270_vm2, %v3879_v49 }
 0x31b   :  { %3266 = vmatpush3.bf16.xpose.msra.mxu0 %v520_v3  ;;  %3272 = vmatpush3.bf16.xpose.msra.mxu1 %v569_v4 }
 0x31c   :  { %3267 = vmatprep.mubr.msk.bf16.mxu0 %vm3702_vm1, %v3701_v15  ;;  %3273 = vmatprep.mubr.msk.bf16.mxu1 %vm3702_vm1, %v3701_v15 }
 0x31d   :  { %3277 = vmatprep.subr.bf16.mxu0 %v3701_v15  ;;  %3283 = vmatprep.subr.bf16.mxu1 %v3701_v15 }
 0x322   :  { %3268 = vmatmul.mubr.msk.bf16.vlgmr.msra.gmra.mrb[12].mxu0 %vm270_vm2, %v3887_v53  ;;  %3274 = vmatmul.mubr.msk.bf16.vlgmr.msra.gmra.mrb[12].mxu1 %vm270_vm2, %v3885_v52 }
 0x323   :  { %3278 = vmatpush3.bf16.xpose.msra.mxu0 %v618_v6  ;;  %3279 = vmatprep.mubr.msk.bf16.mxu0 %vm3702_vm1, %v3701_v15 }
 0x324   :  { %3289 = vmatprep.subr.bf16.mxu0 %v3701_v15  ;;  %3285 = vmatprep.mubr.msk.bf16.mxu1 %vm3702_vm1, %v3701_v15 }
 0x32a   :  { %3280 = vmatmul.mubr.msk.bf16.vlgmr.msra.gmra.mrb[16].mxu0 %vm270_vm2, %v3895_v56 }
 0x32b   :  { %3291 = vmatprep.mubr.msk.bf16.mxu0 %vm3702_vm1, %v3701_v15 }
 0x378   :  { %v311_v8 = vpop.f32.mrb[0].mxu1 }
 0x379   :  { %v3948_v9 = vadd.f32 %v3012_v7, %v311_v8  ;;  %v3239_v10 = vpop.f32.mrb[1].mxu1 }
 0x37a   :  { %v314_v11 = vpop.f32.mrb[2].mxu1 }
 0x37b   :  { %v3240_v12 = vpop.f32.mrb[3].mxu1  ;;  %v660_v13 = vsel %vm270_vm2, %v3948_v9, -inf }
 0x37c   :  { %661 = vmax.xlane.f32.xlu0 %v660_v13  ;;  %v4006_v12 = vld [vmem:[%s4579_s4 + $0x7] ss:$0 sm:$0xff] }
 0x3e5   :  { %v360_v17 = vpop.f32.mrb[4].mxu0  ;;  %v409_v18 = vpop.f32.mrb[4].mxu1 }
 0x3e6   :  { %v3958_v19 = vadd.f32 %v3013_v14, %v360_v17  ;;  %v3960_v20 = vadd.f32 %v3014_v16, %v409_v18  ;;  %v3245_v21 = vpop.f32.mrb[5].mxu0  ;;  %v3251_v22 = vpop.f32.mrb[5].mxu1 }
 0x3e7   :  { %v363_v23 = vpop.f32.mrb[6].mxu0  ;;  %v412_v24 = vpop.f32.mrb[6].mxu1 }
 0x3e8   :  { %v3246_v25 = vpop.f32.mrb[7].mxu0  ;;  %v3252_v26 = vpop.f32.mrb[7].mxu1  ;;  %v663_v27 = vsel %vm270_vm2, %v3958_v19, -inf  ;;  %v666_v28 = vsel %vm270_vm2, %v3960_v20, -inf }
 0x3e9   :  { %664 = vmax.xlane.f32.xlu1 %v663_v27  ;;  %667 = vmax.xlane.f32.xlu0 %v666_v28 }
 0x3ed   :  { %v458_v30 = vpop.f32.mrb[8].mxu0  ;;  %v507_v34 = vpop.f32.mrb[8].mxu1 }
 0x3ee   :  { %v3972_v35 = vadd.f32 %v3015_v29, %v458_v30  ;;  %v3257_v36 = vpop.f32.mrb[9].mxu0  ;;  %v3263_v37 = vpop.f32.mrb[9].mxu1  ;;  %v3974_v40 = vadd.f32 %v3016_v33, %v507_v34 }
 0x3ef   :  { %v461_v38 = vpop.f32.mrb[10].mxu0  ;;  %v510_v39 = vpop.f32.mrb[10].mxu1 }
 0x3f0   :  { %v3258_v42 = vpop.f32.mrb[11].mxu0  ;;  %v3264_v43 = vpop.f32.mrb[11].mxu1  ;;  %v669_v46 = vsel %vm270_vm2, %v3972_v35, -inf  ;;  %v672_v51 = vsel %vm270_vm2, %v3974_v40, -inf }
 0x3f1   :  { %670 = vmax.xlane.f32.xlu0 %v669_v46 }
 0x3f5   :  { %v556_v54 = vpop.f32.mrb[12].mxu0  ;;  %v605_v55 = vpop.f32.mrb[12].mxu1  ;;  %673 = vmax.xlane.f32.xlu0 %v672_v51 }
 0x3f6   :  { %v3986_v57 = vadd.f32 %v3017_v47, %v556_v54  ;;  %v3988_v58 = vadd.f32 %v3018_v50, %v605_v55  ;;  %v3269_v59 = vpop.f32.mrb[13].mxu0  ;;  %v3275_v60 = vpop.f32.mrb[13].mxu1 }
 0x3f7   :  { %v559_v61 = vpop.f32.mrb[14].mxu0  ;;  %v608_v62 = vpop.f32.mrb[14].mxu1 }
 0x3f8   :  { %v3270_v63 = vpop.f32.mrb[15].mxu0  ;;  %v3276_v0 = vpop.f32.mrb[15].mxu1  ;;  %v675_v1 = vsel %vm270_vm2, %v3986_v57, -inf  ;;  %v678_v2 = vsel %vm270_vm2, %v3988_v58, -inf }
 0x3f9   :  { %676 = vmax.xlane.f32.xlu1 %v675_v1  ;;  %679 = vmax.xlane.f32.xlu0 %v678_v2 }
 0x3fd   :  { %v654_v3 = vpop.f32.mrb[16].mxu0 }
 0x3fe   :  { %v3281_v4 = vpop.f32.mrb[17].mxu0 }
 0x3ff   :  { %v657_v5 = vpop.f32.mrb[18].mxu0 }
 0x400   :  { %v3282_v6 = vpop.f32.mrb[19].mxu0 }
 0x409   :  { %v662_v7 = vpop.xlane.xlu0 %661 }
 0x40a   :  { %805 = vrot.lane.b32.xlu1 %v3871_v45, %s3707_s21  ;;  %v684_v8 = vsub.f32 %v3948_v9, %v662_v7  ;;  %v4009_v45 = vadd.f32 %v4006_v12, %v654_v3 }
 0x40c   :  { %v692_v10 = vmul.f32 1.442695, %v684_v8 }
 0x40e   :  { %853 = vrot.lane.b32.xlu1 %v3869_v44, %s3707_s21  ;;  %3576 = vpow2.f32 %v692_v10 }
 0x40f   :  { %756 = vrot.lane.b32.xlu0 %v3863_v41, %s3707_s21  ;;  %v681_v41 = vsel %vm270_vm2, %v4009_v45, -inf }
 0x418   :  { %v4001_v11 = vpop.eup %3576 }
 0x419   :  { %v708_v44 = vsel %vm270_vm2, %v4001_v11, 0.0 }
 0x42e   :  { %709 = vadd.xlane.f32.xlu0 %v708_v44 }
 0x432   :  { %682 = vmax.xlane.f32.xlu1 %v681_v41 }
 0x443   :  { %901 = vrot.lane.b32.xlu1 %v3877_v48, %s3707_s21 }
 0x476   :  { %v665_v9 = vpop.xlane.xlu1 %664  ;;  %v668_v13 = vpop.xlane.xlu0 %667 }
 0x477   :  { %v685_v14 = vsub.f32 %v3958_v19, %v665_v9  ;;  %v686_v16 = vsub.f32 %v3960_v20, %v668_v13 }
 0x479   :  { %v694_v17 = vmul.f32 1.442695, %v685_v14  ;;  %v696_v18 = vmul.f32 1.442695, %v686_v16 }
 0x47b   :  { %3578 = vpow2.f32 %v694_v17 }
 0x47c   :  { %3580 = vpow2.f32 %v696_v18 }
 0x47e   :  { %v671_v21 = vpop.xlane.xlu0 %670 }
 0x47f   :  { %v687_v30 = vsub.f32 %v3972_v35, %v671_v21 }
 0x481   :  { %v698_v34 = vmul.f32 1.442695, %v687_v30 }
 0x482   :  { %v674_v22 = vpop.xlane.xlu0 %673 }
 0x483   :  { %v688_v33 = vsub.f32 %v3974_v40, %v674_v22  ;;  %3582 = vpow2.f32 %v698_v34 }
 0x485   :  { %v4019_v23 = vpop.eup %3578  ;;  %v700_v37 = vmul.f32 1.442695, %v688_v33 }
 0x486   :  { %v4021_v24 = vpop.eup %3580  ;;  %v677_v25 = vpop.xlane.xlu1 %676  ;;  %v711_v48 = vsel %vm270_vm2, %v4019_v23, 0.0 }
 0x487   :  { %v680_v26 = vpop.xlane.xlu0 %679  ;;  %712 = vadd.xlane.f32.xlu1 %v711_v48  ;;  %v714_v19 = vsel %vm270_vm2, %v4021_v24, 0.0  ;;  %v689_v36 = vsub.f32 %v3986_v57, %v677_v25  ;;  %3584 = vpow2.f32 %v700_v37 }
 0x488   :  { %715 = vadd.xlane.f32.xlu0 %v714_v19  ;;  %v690_v38 = vsub.f32 %v3988_v58, %v680_v26 }
 0x489   :  { %v702_v39 = vmul.f32 1.442695, %v689_v36 }
 0x48a   :  { %v806_v20 = vpop.permute.xlu1 %805  ;;  %v704_v42 = vmul.f32 1.442695, %v690_v38 }
 0x48b   :  { %v757_v27 = vpop.permute.xlu0 %756  ;;  %v811_v28 = vsel %vm761_vm3, %v806_v20, 0  ;;  %3586 = vpow2.f32 %v702_v39 }
 0x48c   :  { %v763_v29 = vsel %vm761_vm3, %v757_v27, 0  ;;  %3290 = vmatpush3.bf16.msra.mxu0 %v811_v28  ;;  %3588 = vpow2.f32 %v704_v42 }
 0x48d   :  { %3284 = vmatpush3.bf16.msra.mxu1 %v763_v29  ;;  %3301 = vmatprep.subr.bf16.mxu0 %v3701_v15 }
 0x48e   :  { %3295 = vmatprep.subr.bf16.mxu1 %v3701_v15 }
 0x498   :  { %997 = vrot.lane.b32.xlu1 %v3887_v53, %s3707_s21  ;;  %v4039_v53 = vpop.eup %3582 }
 0x499   :  { %v4041_v43 = vpop.eup %3584  ;;  %v717_v40 = vsel %vm270_vm2, %v4039_v53, 0.0 }
 0x49a   :  { %v4045_v46 = vpop.eup %3586  ;;  %v720_v47 = vsel %vm270_vm2, %v4041_v43, 0.0 }
 0x49b   :  { %v4049_v50 = vpop.eup %3588  ;;  %v723_v54 = vsel %vm270_vm2, %v4045_v46, 0.0 }
 0x49c   :  { %v726_v57 = vsel %vm270_vm2, %v4049_v50, 0.0 }
 0x49e   :  { %949 = vrot.lane.b32.xlu0 %v3879_v49, %s3707_s21  ;;  %v854_v49 = vpop.permute.xlu1 %853 }
 0x49f   :  { %v859_v62 = vsel %vm761_vm3, %v854_v49, 0 }
 0x4bb   :  { %v710_v35 = vpop.xlane.xlu0 %709 }
 0x4bc   :  { %3590 = vrcp.f32 %v710_v35  ;;  %718 = vadd.xlane.f32.xlu1 %v717_v40 }
 0x4bd   :  { %721 = vadd.xlane.f32.xlu0 %v720_v47 }
 0x4bf   :  { %v683_v51 = vpop.xlane.xlu1 %682 }
 0x4c0   :  { %v691_v55 = vsub.f32 %v4009_v45, %v683_v51  ;;  %724 = vadd.xlane.f32.xlu1 %v723_v54 }
 0x4c1   :  { %727 = vadd.xlane.f32.xlu0 %v726_v57 }
 0x4c2   :  { %v706_v58 = vmul.f32 1.442695, %v691_v55  ;;  %v3550_v55 = vld [vmem:[%s4549_s6] sm:$0xff]  }
 0x4c3   :  { %v902_v1 = vpop.permute.xlu1 %901 }
 0x4c4   :  { %3592 = vpow2.f32 %v706_v58  ;;  %v907_v45 = vsel %vm761_vm3, %v902_v1, 0 }
 0x4c6   :  { %v3591_v59 = vpop.eup %3590 }
 0x4c7   :  { %v740_v60 = vmul.f32 %v3591_v59, %v4001_v11 }
 0x4c9   :  { %v748_v61 = vpack.c.bf16 %v740_v60, %v740_v60 }
 0x4cb   :  { %3286 = vmatmul.mubr.msk.bf16.vlgmr.msra.gmra.mrb[16].mxu1 %vm270_vm2, %v748_v61 }
 0x4cc   :  { %3296 = vmatpush3.bf16.msra.mxu1 %v859_v62  ;;  %3297 = vmatprep.mubr.msk.bf16.mxu1 %vm3702_vm1, %v3701_v15 }
 0x4cd   :  { %3307 = vmatprep.subr.bf16.mxu1 %v3701_v15 }
 0x4ce   :  { %v4062_v63 = vpop.eup %3592 }
 0x4cf   :  { %v729_v0 = vsel %vm270_vm2, %v4062_v63, 0.0 }
 0x4d0   :  { %730 = vadd.xlane.f32.xlu1 %v729_v0 }
 0x4d7   :  { %1045 = vrot.lane.b32.xlu0 %v3885_v52, %s3707_s21 }
 0x4e1   :  { %1093 = vrot.lane.b32.xlu1 %v3895_v56, %s3707_s21 }
 0x514   :  { %v713_v2 = vpop.xlane.xlu1 %712 }
 0x515   :  { %3594 = vrcp.f32 %v713_v2  ;;  %v716_v3 = vpop.xlane.xlu0 %715 }
 0x516   :  { %3596 = vrcp.f32 %v716_v3 }
 0x518   :  { %v998_v56 = vpop.permute.xlu1 %997 }
 0x519   :  { %v950_v8 = vpop.permute.xlu0 %949  ;;  %v1003_v26 = vsel %vm761_vm3, %v998_v56, 0 }
 0x51a   :  { %v955_v52 = vsel %vm761_vm3, %v950_v8, 0 }
 0x51f   :  { %v3595_v4 = vpop.eup %3594 }
 0x520   :  { %v3597_v5 = vpop.eup %3596  ;;  %v741_v6 = vmul.f32 %v3595_v4, %v4019_v23 }
 0x521   :  { %v742_v7 = vmul.f32 %v3597_v5, %v4021_v24 }
 0x522   :  { %v749_v10 = vpack.c.bf16 %v741_v6, %v741_v6 }
 0x523   :  { %v750_v11 = vpack.c.bf16 %v742_v7, %v742_v7 }
 0x524   :  { %3292 = vmatmul.mubr.msk.bf16.vlgmr.msra.gmra.mrb[20].mxu0 %vm270_vm2, %v749_v10 }
 0x525   :  { %3298 = vmatmul.mubr.msk.bf16.vlgmr.msra.gmra.mrb[20].mxu1 %vm270_vm2, %v750_v11  ;;  %3302 = vmatpush3.bf16.msra.mxu0 %v907_v45  ;;  %v3551_v11 = vld [vmem:[%s4549_s6 + $0x8] sm:$0xff]  }
 0x526   :  { %3308 = vmatpush3.bf16.msra.mxu1 %v955_v52  ;;  %3303 = vmatprep.mubr.msk.bf16.mxu0 %vm3702_vm1, %v3701_v15 }
 0x527   :  { %3309 = vmatprep.mubr.msk.bf16.mxu1 %vm3702_vm1, %v3701_v15  ;;  %3313 = vmatprep.subr.bf16.mxu0 %v3701_v15 }
 0x528   :  { %3319 = vmatprep.subr.bf16.mxu1 %v3701_v15 }
 0x549   :  { %v719_v44 = vpop.xlane.xlu1 %718 }
 0x54a   :  { %3598 = vrcp.f32 %v719_v44  ;;  %v722_v41 = vpop.xlane.xlu0 %721 }
 0x54b   :  { %3600 = vrcp.f32 %v722_v41 }
 0x54d   :  { %v725_v9 = vpop.xlane.xlu1 %724 }
 0x54e   :  { %3602 = vrcp.f32 %v725_v9  ;;  %v728_v13 = vpop.xlane.xlu0 %727 }
 0x54f   :  { %3604 = vrcp.f32 %v728_v13 }
 0x552   :  { %v1046_v21 = vpop.permute.xlu0 %1045 }
 0x553   :  { %v1051_v48 = vsel %vm761_vm3, %v1046_v21, 0 }
 0x554   :  { %v3599_v14 = vpop.eup %3598 }
 0x555   :  { %v3601_v16 = vpop.eup %3600  ;;  %v743_v17 = vmul.f32 %v3599_v14, %v4039_v53 }
 0x556   :  { %v744_v18 = vmul.f32 %v3601_v16, %v4041_v43 }
 0x557   :  { %v751_v22 = vpack.c.bf16 %v743_v17, %v743_v17 }
 0x558   :  { %v3603_v23 = vpop.eup %3602  ;;  %v752_v24 = vpack.c.bf16 %v744_v18, %v744_v18 }
 0x559   :  { %v3605_v25 = vpop.eup %3604  ;;  %3304 = vmatmul.mubr.msk.bf16.vlgmr.msra.gmra.mrb[24].mxu0 %vm270_vm2, %v751_v22  ;;  %v745_v19 = vmul.f32 %v3603_v23, %v4045_v46 }
 0x55a   :  { %3310 = vmatmul.mubr.msk.bf16.vlgmr.msra.gmra.mrb[24].mxu1 %vm270_vm2, %v752_v24  ;;  %3314 = vmatpush3.bf16.msra.mxu0 %v1003_v26  ;;  %v746_v20 = vmul.f32 %v3605_v25, %v4049_v50 }
 0x55b   :  { %3320 = vmatpush3.bf16.msra.mxu1 %v1051_v48  ;;  %3315 = vmatprep.mubr.msk.bf16.mxu0 %vm3702_vm1, %v3701_v15  ;;  %v753_v28 = vpack.c.bf16 %v745_v19, %v745_v19 }
 0x55c   :  { %3321 = vmatprep.mubr.msk.bf16.mxu1 %vm3702_vm1, %v3701_v15  ;;  %3325 = vmatprep.subr.bf16.mxu0 %v3701_v15  ;;  %v754_v29 = vpack.c.bf16 %v746_v20, %v746_v20 }
 0x55d   :  { %v731_v27 = vpop.xlane.xlu1 %730  ;;  %3331 = vmatprep.subr.bf16.mxu1 %v3701_v15 }
 0x55e   :  { %3606 = vrcp.f32 %v731_v27 }
 0x561   :  { %3316 = vmatmul.mubr.msk.bf16.vlgmr.msra.gmra.mrb[28].mxu0 %vm270_vm2, %v753_v28  ;;  %v1094_v30 = vpop.permute.xlu1 %1093  ;;  %v3036_v28 = vld [vmem:[%s4550_s7] ss:$0 sm:$0xff] }
 0x562   :  { %v1099_v33 = vsel %vm761_vm3, %v1094_v30, 0  ;;  %3322 = vmatmul.mubr.msk.bf16.vlgmr.msra.gmra.mrb[28].mxu1 %vm270_vm2, %v754_v29  ;;  %3327 = vmatprep.mubr.msk.bf16.mxu0 %vm3702_vm1, %v3701_v15 }
 0x563   :  { %3326 = vmatpush3.bf16.msra.mxu0 %v1099_v33  ;;  %3335 = vmatprep.mubr.msk.bf16.mxu1 %vm3702_vm1, %v3701_v15 }
 0x564   :  { %3339 = vmatprep.subr.bf16.mxu0 %v3701_v15  ;;  %3332 = vmatpush3.bf16.msra.mxu1 %v3550_v55  ;;  %v3553_v55 = vld [vmem:[%s4553_s10 + $0x8] sm:$0xff]  }
 0x565   :  { %3333 = vmatprep.subr.bf16.mxu1 %v3701_v15 }
 0x568   :  { %v3607_v34 = vpop.eup %3606  ;;  %3334 = vmatpush3.bf16.msra.mxu1 %v3551_v11  ;;  %v3554_v11 = vld [vmem:[%s4555_s12] sm:$0xff]  }
 0x569   :  { %v747_v36 = vmul.f32 %v3607_v34, %v4062_v63  ;;  %3347 = vmatprep.subr.bf16.mxu1 %v3701_v15 }
 0x56b   :  { %v755_v37 = vpack.c.bf16 %v747_v36, %v747_v36 }
 0x56d   :  { %3328 = vmatmul.mubr.msk.bf16.vlgmr.msra.gmra.mrb[32].mxu0 %vm270_vm2, %v755_v37 }
 0x56e   :  { %3343 = vmatprep.mubr.msk.bf16.mxu0 %vm3702_vm1, %v3701_v15 }
 0x59e   :  { %v799_v38 = vpop.f32.mrb[16].mxu1 }
 0x59f   :  { %v3287_v39 = vpop.f32.mrb[17].mxu1 }
 0x5a0   :  { %v802_v42 = vpop.f32.mrb[18].mxu1 }
 0x5a1   :  { %v3288_v53 = vpop.f32.mrb[19].mxu1 }
 0x5f7   :  { %v847_v43 = vpop.f32.mrb[20].mxu0 }
 0x5f8   :  { %v895_v49 = vpop.f32.mrb[20].mxu1  ;;  %v3293_v35 = vpop.f32.mrb[21].mxu0 }
 0x5f9   :  { %v3299_v40 = vpop.f32.mrb[21].mxu1  ;;  %v850_v46 = vpop.f32.mrb[22].mxu0 }
 0x5fa   :  { %v898_v47 = vpop.f32.mrb[22].mxu1  ;;  %v3294_v50 = vpop.f32.mrb[23].mxu0 }
 0x5fb   :  { %v3300_v51 = vpop.f32.mrb[23].mxu1 }
 0x62c   :  { %v943_v54 = vpop.f32.mrb[24].mxu0 }
 0x62d   :  { %v991_v57 = vpop.f32.mrb[24].mxu1  ;;  %v3305_v58 = vpop.f32.mrb[25].mxu0 }
 0x62e   :  { %v3311_v59 = vpop.f32.mrb[25].mxu1  ;;  %v946_v60 = vpop.f32.mrb[26].mxu0 }
 0x62f   :  { %v994_v61 = vpop.f32.mrb[26].mxu1  ;;  %v3306_v62 = vpop.f32.mrb[27].mxu0 }
 0x630   :  { %v3312_v63 = vpop.f32.mrb[27].mxu1 }
 0x634   :  { %v1039_v0 = vpop.f32.mrb[28].mxu0 }
 0x635   :  { %v3518_v1 = vpack.i.bf16 %v1039_v0, %v847_v43  ;;  %v1087_v2 = vpop.f32.mrb[28].mxu1  ;;  %v3317_v3 = vpop.f32.mrb[29].mxu0 }
 0x636   :  { %v3523_v4 = vpack.i.bf16 %v1087_v2, %v895_v49  ;;  %v3323_v5 = vpop.f32.mrb[29].mxu1  ;;  %v1042_v6 = vpop.f32.mrb[30].mxu0 }
 0x637   :  { %v1090_v7 = vpop.f32.mrb[30].mxu1  ;;  %v3318_v8 = vpop.f32.mrb[31].mxu0  ;;  %3519 = vrot.lane.b32.xlu0 %v3518_v1, %s4568_s28  ;;  %v3040_v1 = vld [vmem:[%s4551_s8] ss:$0 sm:$0xff] }
 0x638   :  { %3524 = vrot.lane.b32.xlu1 %v3523_v4, %s4569_s29  ;;  %v3324_v10 = vpop.f32.mrb[31].mxu1  ;;  %v3041_v5 = vld [vmem:[%s4552_s9] ss:$0 sm:$0xff] }
 0x640   :  { %v1135_v45 = vpop.f32.mrb[32].mxu0 }
 0x641   :  { %v3528_v52 = vpack.i.bf16 %v1135_v45, %v943_v54  ;;  %v3329_v56 = vpop.f32.mrb[33].mxu0  ;;  %v3555_v45 = vld [vmem:[%s4555_s12 + $0x8] sm:$0xff]  }
 0x642   :  { %v1138_v44 = vpop.f32.mrb[34].mxu0  ;;  %v3557_v56 = vld [vmem:[%s4555_s12 + $0x18] sm:$0xff]  }
 0x643   :  { %v3330_v41 = vpop.f32.mrb[35].mxu0  ;;  %3529 = vrot.lane.b32.xlu0 %v3528_v52, %s4567_s1  ;;  %v3556_v52 = vld [vmem:[%s4555_s12 + $0x10] sm:$0xff]   ;;  %v3042_v44 = vld [vmem:[%s4554_s11] ss:$0 sm:$0xff] }
 0x6a9   :  { %v3520_v9 = vpop.permute.xlu0 %3519 }
 0x6aa   :  { %v3525_v13 = vpop.permute.xlu1 %3524  ;;  %v3522_v14 = vunpack.i.h.bf16 %v3520_v9  ;;  %v3521_v16 = vunpack.i.l.bf16 %v3520_v9 }
 0x6ab   :  { %v3527_v17 = vunpack.i.h.bf16 %v3525_v13  ;;  %v3526_v18 = vunpack.i.l.bf16 %v3525_v13 }
 0x6ac   :  { %v1170_v21 = vsel %vm270_vm2, %v991_v57, %v3522_v14  ;;  %v1153_v22 = vsel %vm270_vm2, %v799_v38, %v3521_v16 }
 0x6ad   :  { %v1155_v26 = vsel %vm1154_vm4, %v1153_v22, %v3526_v18  ;;  %v1171_v48 = vsel %vm1154_vm4, %v1170_v21, %v3527_v17 }
 0x6b5   :  { %v3530_v23 = vpop.permute.xlu0 %3529 }
 0x6b6   :  { %v3532_v24 = vunpack.i.h.bf16 %v3530_v23  ;;  %v3531_v25 = vunpack.i.l.bf16 %v3530_v23 }
 0x6b8   :  { %v1157_v19 = vsel %vm1156_vm5, %v1155_v26, %v3531_v25  ;;  %v1172_v20 = vsel %vm1156_vm5, %v1171_v48, %v3532_v24 }
 0x6b9   :  { %v1173_v27 = vpack.c.bf16 %v1172_v20, %v1157_v19 }
 0x6bb   :  { %3336 = vmatmul.mubr.msk.bf16.vlgmr.msra.gmra.mrb[32].mxu1 %vm79_vm0, %v1173_v27 }
 0x6bc   :  { %3355 = vmatprep.mubr.msk.bf16.mxu1 %vm3702_vm1, %v3701_v15  ;;  %3348 = vmatpush3.bf16.msra.mxu1 %v3554_v11 }
 0x6bd   :  { %3349 = vmatprep.subr.bf16.mxu1 %v3701_v15 }
 0x6c0   :  { %3350 = vmatpush3.bf16.msra.mxu1 %v3555_v45 }
 0x6c1   :  { %3351 = vmatprep.subr.bf16.mxu1 %v3701_v15 }
 0x6c4   :  { %3352 = vmatpush3.bf16.msra.mxu1 %v3556_v52 }
 0x6c5   :  { %3353 = vmatprep.subr.bf16.mxu1 %v3701_v15 }
 0x6c8   :  { %3354 = vmatpush3.bf16.msra.mxu1 %v3557_v56  ;;  %v3053_v56 = vld [vmem:[%s4558_s15] ss:$0 sm:$0xff] }
 0x6c9   :  { %3373 = vmatprep.subr.bf16.mxu1 %v3701_v15 }
 0x78e   :  { %v1234_v29 = vpop.f32.mrb[32].mxu1 }
 0x78f   :  { %v1235_v30 = vadd.f32 %v3036_v28, %v1234_v29  ;;  %v3337_v33 = vpop.f32.mrb[33].mxu1 }
 0x790   :  { %v1237_v34 = vpop.f32.mrb[34].mxu1 }
 0x791   :  { %v1238_v36 = vadd.f32 %v3036_v28, %v1237_v34  ;;  %v3338_v37 = vpop.f32.mrb[35].mxu1  ;;  %v1241_v38 = vadd.f32 %v1235_v30, %v3847_v31 }
 0x793   :  { %v1245_v39 = vsel %vm79_vm0, %v1241_v38, 0.0  ;;  %v1242_v42 = vadd.f32 %v1238_v36, %v3849_v32  ;;  %v3552_v32 = vld [vmem:[%s4553_s10] sm:$0xff]  }
 0x794   :  { %1246 = vadd.xlane.f32.xlu1 %v1245_v39  ;;  %3340 = vmatpush3.bf16.msra.mxu0 %v3552_v32  ;;  %v3046_v39 = vld [vmem:[%s4556_s13] ss:$0 sm:$0xff] }
 0x795   :  { %v1248_v53 = vsel %vm79_vm0, %v1242_v42, 0.0  ;;  %3341 = vmatprep.subr.bf16.mxu0 %v3701_v15 }
 0x796   :  { %1249 = vadd.xlane.f32.xlu0 %v1248_v53 }
 0x798   :  { %3342 = vmatpush3.bf16.msra.mxu0 %v3553_v55 }
 0x799   :  { %3359 = vmatprep.subr.bf16.mxu0 %v3701_v15 }
 0x821   :  { %v1247_v43 = vpop.xlane.xlu1 %1246 }
 0x822   :  { %v1251_v49 = vmul.f32 0.03125, %v1247_v43 }
 0x823   :  { %v1250_v35 = vpop.xlane.xlu0 %1249 }
 0x824   :  { %v1253_v40 = vsub.f32 %v1241_v38, %v1251_v49  ;;  %v1252_v46 = vmul.f32 0.03125, %v1250_v35 }
 0x826   :  { %v1254_v47 = vsub.f32 %v1242_v42, %v1252_v46  ;;  %v1255_v50 = vmul.f32 %v1253_v40, %v1253_v40 }
 0x828   :  { %v1257_v51 = vsel %vm79_vm0, %v1255_v50, 0.0  ;;  %v1256_v54 = vmul.f32 %v1254_v47, %v1254_v47 }
 0x829   :  { %1258 = vadd.xlane.f32.xlu0 %v1257_v51 }
 0x82a   :  { %v1260_v31 = vsel %vm79_vm0, %v1256_v54, 0.0 }
 0x82d   :  { %1261 = vadd.xlane.f32.xlu0 %v1260_v31 }
 0x8b6   :  { %v1259_v57 = vpop.xlane.xlu0 %1258 }
 0x8b7   :  { %v1263_v58 = vmul.f32 0.03125, %v1259_v57 }
 0x8b9   :  { %v1265_v59 = vadd.f32 1e-12, %v1263_v58 }
 0x8ba   :  { %v1262_v60 = vpop.xlane.xlu0 %1261 }
 0x8bb   :  { %3608 = vrsqrt.f32 %v1265_v59  ;;  %v1264_v61 = vmul.f32 0.03125, %v1262_v60 }
 0x8bd   :  { %v1266_v62 = vadd.f32 1e-12, %v1264_v61 }
 0x8bf   :  { %3610 = vrsqrt.f32 %v1266_v62 }
 0x8c5   :  { %v3609_v63 = vpop.eup %3608 }
 0x8c6   :  { %v1269_v0 = vmul.f32 %v3609_v63, %v1253_v40  ;;  %v3558_v63 = vld [vmem:[%s4576_s26 + $0x10] sm:$0xff]  }
 0x8c8   :  { %v1277_v3 = vmul.f32 %v3040_v1, %v1269_v0  ;;  %v3559_v0 = vld [vmem:[%s4576_s26 + $0x18] sm:$0xff]  }
 0x8c9   :  { %v3611_v2 = vpop.eup %3610 }
 0x8ca   :  { %v1270_v4 = vmul.f32 %v3611_v2, %v1254_v47  ;;  %v1285_v7 = vadd.f32 %v3041_v5, %v1277_v3 }
 0x8cc   :  { %v1278_v6 = vmul.f32 %v3040_v1, %v1270_v4 }
 0x8ce   :  { %v1286_v8 = vadd.f32 %v3041_v5, %v1278_v6 }
 0x8d0   :  { %v1287_v10 = vpack.c.bf16 %v1286_v8, %v1285_v7 }
 0x8d2   :  { %3344 = vmatmul.mubr.msk.bf16.vlgmr.msra.gmra.mrb[36].mxu0 %vm79_vm0, %v1287_v10 }
 0x8d3   :  { %3363 = vmatprep.mubr.msk.bf16.mxu0 %vm3702_vm1, %v3701_v15  ;;  %3360 = vmatpush3.bf16.msra.mxu0 %v3558_v63 }
 0x8d4   :  { %3361 = vmatprep.subr.bf16.mxu0 %v3701_v15 }
 0x8d7   :  { %3362 = vmatpush3.bf16.msra.mxu0 %v3559_v0 }
 0x8d8   :  { %3367 = vmatprep.subr.bf16.mxu0 %v3701_v15 }
 0x9a5   :  { %v1348_v41 = vpop.f32.mrb[36].mxu0 }
 0x9a6   :  { %v1349_v9 = vadd.f32 %v3042_v44, %v1348_v41  ;;  %v3345_v13 = vpop.f32.mrb[37].mxu0 }
 0x9a7   :  { %v1351_v14 = vpop.f32.mrb[38].mxu0 }
 0x9a8   :  { %v1357_v16 = vmul.f32 0.044715, %v1349_v9  ;;  %v1352_v17 = vadd.f32 %v3042_v44, %v1351_v14  ;;  %v3346_v18 = vpop.f32.mrb[39].mxu0  ;;  %v1355_v30 = vmul.f32 0.5, %v1349_v9  ;;  %v3059_v14 = vld [vmem:[%s4548_s5 + $0x1] ss:$0 sm:$0xff] }
 0x9aa   :  { %v1359_v21 = vmul.f32 %v1357_v16, %v1349_v9  ;;  %v1358_v22 = vmul.f32 0.044715, %v1352_v17  ;;  %v1356_v33 = vmul.f32 0.5, %v1352_v17 }
 0x9ac   :  { %v1361_v23 = vmul.f32 %v1359_v21, %v1349_v9  ;;  %v1360_v24 = vmul.f32 %v1358_v22, %v1352_v17 }
 0x9ae   :  { %v1363_v25 = vadd.f32 %v1361_v23, %v1349_v9  ;;  %v1362_v26 = vmul.f32 %v1360_v24, %v1352_v17 }
 0x9b0   :  { %v1365_v48 = vmul.f32 0.7978846, %v1363_v25  ;;  %v1364_v19 = vadd.f32 %v1362_v26, %v1352_v17 }
 0x9b2   :  { %3612 = vtanh.f32 %v1365_v48  ;;  %v1366_v20 = vmul.f32 0.7978846, %v1364_v19 }
 0x9b4   :  { %3614 = vtanh.f32 %v1366_v20 }
 0x9bc   :  { %v3613_v27 = vpop.eup %3612 }
 0x9bd   :  { %v1369_v28 = vadd.f32 1.0, %v3613_v27 }
 0x9be   :  { %v3615_v29 = vpop.eup %3614 }
 0x9bf   :  { %v1370_v34 = vadd.f32 1.0, %v3615_v29  ;;  %v1371_v36 = vmul.f32 %v1369_v28, %v1355_v30 }
 0x9c1   :  { %v1372_v37 = vmul.f32 %v1370_v34, %v1356_v33 }
 0x9c3   :  { %v1373_v38 = vpack.c.bf16 %v1372_v37, %v1371_v36 }
 0x9c5   :  { %3356 = vmatmul.mubr.msk.bf16.vlgmr.msra.gmra.mrb[36].mxu1 %vm1413_vm6, %v1373_v38 }
 0x9c6   :  { %3375 = vmatprep.mubr.msk.bf16.mxu1 %vm3702_vm1, %v3701_v15 }
 0xa98   :  { %v1451_v42 = vpop.f32.mrb[36].mxu1 }
 0xa99   :  { %v1452_v53 = vadd.f32 %v3046_v39, %v1451_v42  ;;  %v3357_v43 = vpop.f32.mrb[37].mxu1 }
 0xa9a   :  { %v1454_v49 = vpop.f32.mrb[38].mxu1 }
 0xa9b   :  { %v1455_v35 = vadd.f32 %v3046_v39, %v1454_v49  ;;  %v3358_v40 = vpop.f32.mrb[39].mxu1  ;;  %v1458_v46 = vadd.f32 %v1452_v53, %v1285_v7 }
 0xa9d   :  { %v1462_v47 = vsel %vm79_vm0, %v1458_v46, 0.0  ;;  %v1459_v50 = vadd.f32 %v1455_v35, %v1286_v8  ;;  %v3052_v8 = vld [vmem:[%s4557_s14] ss:$0 sm:$0xff] }
 0xa9e   :  { %1463 = vadd.xlane.f32.xlu1 %v1462_v47 }
 0xa9f   :  { %v1465_v51 = vsel %vm79_vm0, %v1459_v50, 0.0 }
 0xaa0   :  { %1466 = vadd.xlane.f32.xlu0 %v1465_v51 }
 0xb2b   :  { %v1464_v54 = vpop.xlane.xlu1 %1463 }
 0xb2c   :  { %v1468_v31 = vmul.f32 0.03125, %v1464_v54 }
 0xb2d   :  { %v1467_v32 = vpop.xlane.xlu0 %1466 }
 0xb2e   :  { %v1470_v55 = vsub.f32 %v1458_v46, %v1468_v31  ;;  %v1469_v57 = vmul.f32 0.03125, %v1467_v32 }
 0xb30   :  { %v1471_v58 = vsub.f32 %v1459_v50, %v1469_v57  ;;  %v1472_v59 = vmul.f32 %v1470_v55, %v1470_v55 }
 0xb32   :  { %v1474_v60 = vsel %vm79_vm0, %v1472_v59, 0.0  ;;  %v1473_v61 = vmul.f32 %v1471_v58, %v1471_v58 }
 0xb33   :  { %1475 = vadd.xlane.f32.xlu1 %v1474_v60  ;;  %v3670_v60 = vld [vmem:[%s4579_s4] ss:$0 sm:$0xff] }
 0xb34   :  { %v1477_v62 = vsel %vm79_vm0, %v1473_v61, 0.0 }
 0xb35   :  { %1478 = vadd.xlane.f32.xlu0 %v1477_v62 }
 0xbc0   :  { %v1476_v1 = vpop.xlane.xlu1 %1475 }
 0xbc1   :  { %v1480_v2 = vmul.f32 0.03125, %v1476_v1 }
 0xbc2   :  { %v1479_v3 = vpop.xlane.xlu0 %1478 }
 0xbc3   :  { %v1482_v4 = vadd.f32 1e-12, %v1480_v2  ;;  %v1481_v5 = vmul.f32 0.03125, %v1479_v3 }
 0xbc5   :  { %3616 = vrsqrt.f32 %v1482_v4  ;;  %v1483_v6 = vadd.f32 1e-12, %v1481_v5  ;;  %v3671_v4 = vld [vmem:[%s4579_s4 + $0x1] ss:$0 sm:$0xff] }
 0xbc7   :  { %3618 = vrsqrt.f32 %v1483_v6 }
 0xbcf   :  { %v3617_v7 = vpop.eup %3616 }
 0xbd0   :  { %v1486_v10 = vmul.f32 %v3617_v7, %v1470_v55 }
 0xbd1   :  { %v3619_v11 = vpop.eup %3618 }
 0xbd2   :  { %v1494_v45 = vmul.f32 %v3052_v8, %v1486_v10  ;;  %v1487_v52 = vmul.f32 %v3619_v11, %v1471_v58  ;;  %v3672_v11 = vld [vmem:[%s4579_s4 + $0x2] ss:$0 sm:$0xff] }
 0xbd4   :  { %v1495_v44 = vmul.f32 %v3052_v8, %v1487_v52  ;;  %v4197_v41 = vadd.f32 %v3053_v56, %v1494_v45 }
 0xbd6   :  { %v4199_v9 = vadd.f32 %v3053_v56, %v1495_v44 }
 0xbd8   :  { %v1504_v13 = vpack.c.bf16 %v4199_v9, %v4197_v41 }
 0xbda   :  { %3364 = vmatmul.mubr.msk.bf16.vlgmr.msra.gmra.mrb[40].mxu0 %vm79_vm0, %v1504_v13 }
 0xbdb   :  { %3369 = vmatprep.mubr.msk.bf16.mxu0 %vm3702_vm1, %v3701_v15 }
 0xcad   :  { %v1567_v16 = vpop.f32.mrb[40].mxu0 }
 0xcae   :  { %v1568_v17 = vadd.f32 %v3059_v14, %v1567_v16  ;;  %v3365_v18 = vpop.f32.mrb[41].mxu0 }
 0xcaf   :  { %v1570_v21 = vpop.f32.mrb[42].mxu0 }
 0xcb0   :  { %1578 = vrot.lane.b32.xlu0 %v1568_v17, %s3703_s24  ;;  %1575 = vrot.lane.b32.xlu1 %v1568_v17, %s3704_s2  ;;  %v3366_v22 = vpop.f32.mrb[43].mxu0  ;;  %v1571_v23 = vadd.f32 %v3059_v14, %v1570_v21  ;;  %v1594_v24 = vpack.c.bf16 %v1568_v17, %v1568_v17  ;;  %v3674_v21 = vld [vmem:[%s4579_s4 + $0x3] ss:$0 sm:$0xff] }
 0xcb2   :  { %v4226_v28 = vpack.c.bf16 %v1571_v23, %v1571_v23 }
 0xcb4   :  { %1581 = vrot.lane.b32.xlu1 %v1568_v17, %s3705_s25  ;;  %1591 = vrot.lane.b32.xlu0 %v1571_v23, %s3705_s25  ;;  %v3673_v17 = vld [vmem:[%s4579_s4 + $0x4] ss:$0 sm:$0xff]  ;;  %s4581_s25 = smov 8  }
 0xcb8   :  { %1585 = vrot.lane.b32.xlu1 %v1571_v23, %s3704_s2 }
 0xcbc   :  { %1588 = vrot.lane.b32.xlu1 %v1571_v23, %s3703_s24 }
 0xcc0   :  { %1603 = vrot.lane.b32.xlu1 %v1594_v24, %s3706_s3 }
 0xd22   :  { %v1579_v25 = vpop.permute.xlu0 %1578  ;;  %v1576_v26 = vpop.permute.xlu1 %1575 }
 0xd23   :  { %v4216_v48 = vpack.c.bf16 %v1579_v25, %v1579_v25  ;;  %v4218_v19 = vpack.c.bf16 %v1576_v26, %v1576_v26 }
 0xd25   :  { %1652 = vrot.lane.b32.xlu0 %v4218_v19, %s3706_s3  ;;  %1701 = vrot.lane.b32.xlu1 %v4216_v48, %s3706_s3 }
 0xd26   :  { %v1582_v20 = vpop.permute.xlu1 %1581  ;;  %v1592_v33 = vpop.permute.xlu0 %1591 }
 0xd27   :  { %v4224_v27 = vpack.c.bf16 %v1582_v20, %v1582_v20  ;;  %v4236_v36 = vpack.c.bf16 %v1592_v33, %v1592_v33 }
 0xd29   :  { %1750 = vrot.lane.b32.xlu0 %v4224_v27, %s3706_s3  ;;  %1799 = vrot.lane.b32.xlu1 %v4226_v28, %s3706_s3 }
 0xd2a   :  { %v1586_v29 = vpop.permute.xlu1 %1585 }
 0xd2b   :  { %v4232_v30 = vpack.c.bf16 %v1586_v29, %v1586_v29 }
 0xd2d   :  { %1848 = vrot.lane.b32.xlu0 %v4232_v30, %s3706_s3 }
 0xd2e   :  { %v1589_v34 = vpop.permute.xlu1 %1588 }
 0xd2f   :  { %v4238_v37 = vpack.c.bf16 %v1589_v34, %v1589_v34 }
 0xd31   :  { %1946 = vrot.lane.b32.xlu0 %v4236_v36, %s3706_s3  ;;  %1897 = vrot.lane.b32.xlu1 %v4238_v37, %s3706_s3  ;;  %s4582_s3 = smov 24  }
 0xd32   :  { %v1604_v38 = vpop.permute.xlu1 %1603 }
 0xd33   :  { %v1609_v39 = vsel %vm270_vm2, %v1604_v38, 0 }
 0xd34   :  { %3368 = vmatpush3.bf16.xpose.msra.mxu0 %v1609_v39 }
 0xd35   :  { %2090 = vrot.lane.b32.xlu1 %v1594_v24, %s3707_s21  ;;  %3379 = vmatprep.subr.bf16.mxu0 %v3701_v15 }
 0xd3b   :  { %3370 = vmatmul.mubr.msk.bf16.vlgmr.msra.gmra.mrb[44].mxu0 %vm270_vm2, %v1594_v24 }
 0xd3c   :  { %3381 = vmatprep.mubr.msk.bf16.mxu0 %vm3702_vm1, %v3701_v15 }
 0xd97   :  { %v1653_v42 = vpop.permute.xlu0 %1652  ;;  %v1702_v53 = vpop.permute.xlu1 %1701 }
 0xd98   :  { %v1658_v43 = vsel %vm270_vm2, %v1653_v42, 0  ;;  %v1707_v49 = vsel %vm270_vm2, %v1702_v53, 0  ;;  %v3675_v42 = vld [vmem:[%s4579_s4 + $0x5] ss:$0 sm:$0xff] }
 0xd99   :  { %3374 = vmatpush3.bf16.xpose.msra.mxu1 %v1658_v43  ;;  %3380 = vmatpush3.bf16.xpose.msra.mxu0 %v1707_v49  ;;  %v3676_v43 = vld [vmem:[%s4579_s4 + $0x6] ss:$0 sm:$0xff]  ;;  %s4580_s4 = smov 16  }
 0xd9a   :  { %3385 = vmatprep.subr.bf16.mxu1 %v3701_v15  ;;  %3391 = vmatprep.subr.bf16.mxu0 %v3701_v15 }
 0xd9b   :  { %v1751_v35 = vpop.permute.xlu0 %1750  ;;  %v1800_v40 = vpop.permute.xlu1 %1799 }
 0xd9c   :  { %v1756_v46 = vsel %vm270_vm2, %v1751_v35, 0  ;;  %v1805_v47 = vsel %vm270_vm2, %v1800_v40, 0 }
 0xd9f   :  { %v1849_v50 = vpop.permute.xlu0 %1848 }
 0xda0   :  { %3376 = vmatmul.mubr.msk.bf16.vlgmr.msra.gmra.mrb[40].mxu1 %vm270_vm2, %v4218_v19  ;;  %3382 = vmatmul.mubr.msk.bf16.vlgmr.msra.gmra.mrb[48].mxu0 %vm270_vm2, %v4216_v48  ;;  %v1854_v54 = vsel %vm270_vm2, %v1849_v50, 0 }
 0xda1   :  { %3386 = vmatpush3.bf16.xpose.msra.mxu1 %v1756_v46  ;;  %3392 = vmatpush3.bf16.xpose.msra.mxu0 %v1805_v47 }
 0xda2   :  { %3387 = vmatprep.mubr.msk.bf16.mxu1 %vm3702_vm1, %v3701_v15  ;;  %3393 = vmatprep.mubr.msk.bf16.mxu0 %vm3702_vm1, %v3701_v15 }
 0xda3   :  { %3397 = vmatprep.subr.bf16.mxu1 %v3701_v15  ;;  %3403 = vmatprep.subr.bf16.mxu0 %v3701_v15  ;;  %v1898_v51 = vpop.permute.xlu1 %1897  ;;  %v1947_v32 = vpop.permute.xlu0 %1946 }
 0xda4   :  { %v1903_v31 = vsel %vm270_vm2, %v1898_v51, 0  ;;  %v1952_v57 = vsel %vm270_vm2, %v1947_v32, 0 }
 0xda7   :  { %v2091_v55 = vpop.permute.xlu1 %2090 }
 0xda8   :  { %3388 = vmatmul.mubr.msk.bf16.vlgmr.msra.gmra.mrb[44].mxu1 %vm270_vm2, %v4224_v27  ;;  %3394 = vmatmul.mubr.msk.bf16.vlgmr.msra.gmra.mrb[52].mxu0 %vm270_vm2, %v4226_v28  ;;  %v2096_v58 = vsel %vm761_vm3, %v2091_v55, 0 }
 0xda9   :  { %3398 = vmatpush3.bf16.xpose.msra.mxu1 %v1854_v54  ;;  %3404 = vmatpush3.bf16.xpose.msra.mxu0 %v1903_v31 }
 0xdaa   :  { %3399 = vmatprep.mubr.msk.bf16.mxu1 %vm3702_vm1, %v3701_v15  ;;  %3405 = vmatprep.mubr.msk.bf16.mxu0 %vm3702_vm1, %v3701_v15 }
 0xdab   :  { %3409 = vmatprep.subr.bf16.mxu1 %v3701_v15  ;;  %3415 = vmatprep.subr.bf16.mxu0 %v3701_v15 }
 0xdb0   :  { %3400 = vmatmul.mubr.msk.bf16.vlgmr.msra.gmra.mrb[48].mxu1 %vm270_vm2, %v4232_v30  ;;  %3406 = vmatmul.mubr.msk.bf16.vlgmr.msra.gmra.mrb[56].mxu0 %vm270_vm2, %v4238_v37 }
 0xdb1   :  { %3410 = vmatpush3.bf16.xpose.msra.mxu1 %v1952_v57  ;;  %3416 = vmatpush3.bf16.msra.mxu0 %v2096_v58 }
 0xdb2   :  { %3411 = vmatprep.mubr.msk.bf16.mxu1 %vm3702_vm1, %v3701_v15  ;;  %3421 = vmatprep.subr.bf16.mxu1 %v3701_v15 }
 0xdb3   :  { %3417 = vmatprep.mubr.msk.bf16.mxu0 %vm3702_vm1, %v3701_v15  ;;  %3427 = vmatprep.subr.bf16.mxu0 %v3701_v15 }
 0xdb8   :  { %3412 = vmatmul.mubr.msk.bf16.vlgmr.msra.gmra.mrb[52].mxu1 %vm270_vm2, %v4236_v36 }
 0xdb9   :  { %3423 = vmatprep.mubr.msk.bf16.mxu1 %vm3702_vm1, %v3701_v15 }
 0xe0e   :  { %v1645_v59 = vpop.f32.mrb[44].mxu0 }
 0xe0f   :  { %v4297_v61 = vadd.f32 %v3670_v60, %v1645_v59  ;;  %v3371_v62 = vpop.f32.mrb[45].mxu0 }
 0xe10   :  { %v1648_v63 = vpop.f32.mrb[46].mxu0 }
 0xe11   :  { %v3372_v0 = vpop.f32.mrb[47].mxu0  ;;  %v1994_v1 = vsel %vm270_vm2, %v4297_v61, -inf }
 0xe12   :  { %1995 = vmax.xlane.f32.xlu1 %v1994_v1 }
 0xe73   :  { %v1694_v2 = vpop.f32.mrb[40].mxu1  ;;  %v1743_v3 = vpop.f32.mrb[48].mxu0 }
 0xe74   :  { %v4304_v5 = vadd.f32 %v3671_v4, %v1694_v2  ;;  %v3377_v6 = vpop.f32.mrb[41].mxu1  ;;  %v3383_v7 = vpop.f32.mrb[49].mxu0  ;;  %v4309_v45 = vadd.f32 %v3672_v11, %v1743_v3 }
 0xe75   :  { %v1697_v8 = vpop.f32.mrb[42].mxu1  ;;  %v1746_v10 = vpop.f32.mrb[50].mxu0 }
 0xe76   :  { %v3378_v52 = vpop.f32.mrb[43].mxu1  ;;  %v3384_v56 = vpop.f32.mrb[51].mxu0  ;;  %v1997_v44 = vsel %vm270_vm2, %v4304_v5, -inf  ;;  %v2000_v13 = vsel %vm270_vm2, %v4309_v45, -inf }
 0xe77   :  { %1998 = vmax.xlane.f32.xlu0 %v1997_v44 }
 0xe7b   :  { %v1841_v14 = vpop.f32.mrb[52].mxu0  ;;  %2001 = vmax.xlane.f32.xlu0 %v2000_v13  ;;  %v1792_v16 = vpop.f32.mrb[44].mxu1 }
 0xe7c   :  { %v1842_v18 = vadd.f32 %v3673_v17, %v1841_v14  ;;  %v1793_v22 = vadd.f32 %v3674_v21, %v1792_v16  ;;  %v3389_v23 = vpop.f32.mrb[45].mxu1  ;;  %v3395_v24 = vpop.f32.mrb[53].mxu0 }
 0xe7d   :  { %v1795_v25 = vpop.f32.mrb[46].mxu1  ;;  %v1844_v26 = vpop.f32.mrb[54].mxu0 }
 0xe7e   :  { %v3390_v20 = vpop.f32.mrb[47].mxu1  ;;  %v3396_v29 = vpop.f32.mrb[55].mxu0  ;;  %v2006_v33 = vsel %vm270_vm2, %v1842_v18, -inf  ;;  %v2003_v34 = vsel %vm270_vm2, %v1793_v22, -inf }
 0xe7f   :  { %2007 = vmax.xlane.f32.xlu1 %v2006_v33  ;;  %2004 = vmax.xlane.f32.xlu0 %v2003_v34 }
 0xe83   :  { %v1890_v38 = vpop.f32.mrb[48].mxu1  ;;  %v1939_v39 = vpop.f32.mrb[56].mxu0 }
 0xe84   :  { %v4326_v53 = vadd.f32 %v3675_v42, %v1890_v38  ;;  %v1940_v49 = vadd.f32 %v3676_v43, %v1939_v39  ;;  %v3401_v35 = vpop.f32.mrb[49].mxu1  ;;  %v3407_v40 = vpop.f32.mrb[57].mxu0 }
 0xe85   :  { %v1893_v46 = vpop.f32.mrb[50].mxu1  ;;  %v1942_v47 = vpop.f32.mrb[58].mxu0 }
 0xe86   :  { %v3402_v50 = vpop.f32.mrb[51].mxu1  ;;  %v3408_v51 = vpop.f32.mrb[59].mxu0  ;;  %v2012_v54 = vsel %vm270_vm2, %v1940_v49, -inf  ;;  %v2009_v31 = vsel %vm270_vm2, %v4326_v53, -inf }
 0xe87   :  { %2013 = vmax.xlane.f32.xlu1 %v2012_v54  ;;  %2010 = vmax.xlane.f32.xlu0 %v2009_v31 }
 0xe8b   :  { %v1988_v32 = vpop.f32.mrb[52].mxu1 }
 0xe8c   :  { %v4335_v55 = vadd.f32 %v4006_v12, %v1988_v32  ;;  %v3413_v57 = vpop.f32.mrb[53].mxu1 }
 0xe8d   :  { %v1991_v58 = vpop.f32.mrb[54].mxu1 }
 0xe8e   :  { %v3414_v59 = vpop.f32.mrb[55].mxu1  ;;  %v2015_v60 = vsel %vm270_vm2, %v4335_v55, -inf }
 0xe8f   :  { %2016 = vmax.xlane.f32.xlu0 %v2015_v60 }
 0xe98   :  { %2186 = vrot.lane.b32.xlu1 %v4216_v48, %s3707_s21 }
 0xe9c   :  { %2234 = vrot.lane.b32.xlu1 %v4224_v27, %s3707_s21 }
 0xe9f   :  { %v1996_v62 = vpop.xlane.xlu1 %1995 }
 0xea0   :  { %v2018_v12 = vsub.f32 %v4297_v61, %v1996_v62 }
 0xea2   :  { %v2026_v63 = vmul.f32 1.442695, %v2018_v12 }
 0xea4   :  { %3620 = vpow2.f32 %v2026_v63 }
 0xea5   :  { %2138 = vrot.lane.b32.xlu0 %v4218_v19, %s3707_s21 }
 0xeae   :  { %v4346_v0 = vpop.eup %3620 }
 0xeaf   :  { %v2042_v1 = vsel %vm270_vm2, %v4346_v0, 0.0 }
 0xec0   :  { %2043 = vadd.xlane.f32.xlu1 %v2042_v1 }
 0xed1   :  { %2282 = vrot.lane.b32.xlu1 %v4226_v28, %s3707_s21 }
 0xf04   :  { %v1999_v48 = vpop.xlane.xlu0 %1998 }
 0xf05   :  { %v2019_v27 = vsub.f32 %v4304_v5, %v1999_v48 }
 0xf07   :  { %v2028_v2 = vmul.f32 1.442695, %v2019_v27 }
 0xf08   :  { %v2002_v3 = vpop.xlane.xlu0 %2001 }
 0xf09   :  { %3622 = vpow2.f32 %v2028_v2  ;;  %v2020_v19 = vsub.f32 %v4309_v45, %v2002_v3 }
 0xf0b   :  { %v2030_v61 = vmul.f32 1.442695, %v2020_v19 }
 0xf0c   :  { %v2008_v4 = vpop.xlane.xlu1 %2007  ;;  %v2005_v6 = vpop.xlane.xlu0 %2004 }
 0xf0d   :  { %3624 = vpow2.f32 %v2030_v61  ;;  %v2022_v7 = vsub.f32 %v1842_v18, %v2008_v4  ;;  %v2021_v8 = vsub.f32 %v1793_v22, %v2005_v6 }
 0xf0f   :  { %v2034_v10 = vmul.f32 1.442695, %v2022_v7  ;;  %v2032_v11 = vmul.f32 1.442695, %v2021_v8 }
 0xf11   :  { %3626 = vpow2.f32 %v2034_v10 }
 0xf12   :  { %3628 = vpow2.f32 %v2032_v11 }
 0xf13   :  { %v3623_v52 = vpop.eup %3622 }
 0xf14   :  { %v2014_v28 = vpop.xlane.xlu1 %2013  ;;  %v2045_v56 = vsel %vm270_vm2, %v3623_v52, 0.0  ;;  %v2011_v14 = vpop.xlane.xlu0 %2010 }
 0xf15   :  { %v2024_v5 = vsub.f32 %v1940_v49, %v2014_v28  ;;  %2046 = vadd.xlane.f32.xlu0 %v2045_v56  ;;  %v2023_v20 = vsub.f32 %v4326_v53, %v2011_v14 }
 0xf17   :  { %v3625_v44 = vpop.eup %3624  ;;  %v2038_v13 = vmul.f32 1.442695, %v2024_v5  ;;  %v2036_v29 = vmul.f32 1.442695, %v2023_v20 }
 0xf18   :  { %v2048_v45 = vsel %vm270_vm2, %v3625_v44, 0.0  ;;  %v2187_v34 = vpop.permute.xlu1 %2186 }
 0xf19   :  { %3630 = vpow2.f32 %v2038_v13  ;;  %2049 = vadd.xlane.f32.xlu1 %v2048_v45  ;;  %v2192_v46 = vsel %vm761_vm3, %v2187_v34, 0 }
 0xf1a   :  { %3632 = vpow2.f32 %v2036_v29 }
 0xf1b   :  { %v4356_v16 = vpop.eup %3626 }
 0xf1c   :  { %v4358_v17 = vpop.eup %3628  ;;  %v2017_v18 = vpop.xlane.xlu0 %2016  ;;  %v2054_v21 = vsel %vm270_vm2, %v4356_v16, 0.0 }
 0xf1d   :  { %2055 = vadd.xlane.f32.xlu1 %v2054_v21  ;;  %v2051_v22 = vsel %vm270_vm2, %v4358_v17, 0.0  ;;  %v2025_v33 = vsub.f32 %v4335_v55, %v2017_v18  ;;  %v2235_v39 = vpop.permute.xlu1 %2234 }
 0xf1e   :  { %2052 = vadd.xlane.f32.xlu0 %v2051_v22  ;;  %v2240_v59 = vsel %vm761_vm3, %v2235_v39, 0 }
 0xf1f   :  { %v2040_v38 = vmul.f32 1.442695, %v2025_v33 }
 0xf20   :  { %v2139_v23 = vpop.permute.xlu0 %2138 }
 0xf21   :  { %v2144_v24 = vsel %vm761_vm3, %v2139_v23, 0  ;;  %3634 = vpow2.f32 %v2040_v38 }
 0xf22   :  { %3422 = vmatpush3.bf16.msra.mxu1 %v2144_v24 }
 0xf23   :  { %v4365_v25 = vpop.eup %3630  ;;  %3433 = vmatprep.subr.bf16.mxu1 %v3701_v15 }
 0xf24   :  { %v2060_v26 = vsel %vm270_vm2, %v4365_v25, 0.0  ;;  %v4376_v43 = vpop.eup %3632 }
 0xf25   :  { %2061 = vadd.xlane.f32.xlu1 %v2060_v26 }
 0xf2b   :  { %v4380_v49 = vpop.eup %3634 }
 0xf34   :  { %2330 = vrot.lane.b32.xlu0 %v4232_v30, %s3707_s21  ;;  %v2057_v30 = vsel %vm270_vm2, %v4376_v43, 0.0 }
 0xf36   :  { %2378 = vrot.lane.b32.xlu1 %v4238_v37, %s3707_s21  ;;  %v2063_v37 = vsel %vm270_vm2, %v4380_v49, 0.0 }
 0xf4d   :  { %v2044_v42 = vpop.xlane.xlu1 %2043 }
 0xf4e   :  { %3636 = vrcp.f32 %v2044_v42 }
 0xf51   :  { %v2283_v47 = vpop.permute.xlu1 %2282 }
 0xf53   :  { %2058 = vadd.xlane.f32.xlu0 %v2057_v30 }
 0xf57   :  { %2064 = vadd.xlane.f32.xlu0 %v2063_v37 }
 0xf58   :  { %v3637_v53 = vpop.eup %3636 }
 0xf59   :  { %v2074_v35 = vmul.f32 %v3637_v53, %v4346_v0  ;;  %v2288_v0 = vsel %vm761_vm3, %v2283_v47, 0 }
 0xf5b   :  { %v2082_v40 = vpack.c.bf16 %v2074_v35, %v2074_v35 }
 0xf5d   :  { %3418 = vmatmul.mubr.msk.bf16.vlgmr.msra.gmra.mrb[60].mxu0 %vm270_vm2, %v2082_v40 }
 0xf5e   :  { %3428 = vmatpush3.bf16.msra.mxu0 %v2192_v46  ;;  %3429 = vmatprep.mubr.msk.bf16.mxu0 %vm3702_vm1, %v3701_v15 }
 0xf5f   :  { %3439 = vmatprep.subr.bf16.mxu0 %v3701_v15 }
 0xf6d   :  { %2426 = vrot.lane.b32.xlu0 %v4236_v36, %s3707_s21 }
 0xfa2   :  { %v2047_v50 = vpop.xlane.xlu0 %2046 }
 0xfa3   :  { %3638 = vrcp.f32 %v2047_v50  ;;  %v3560_v50 = vld [vmem:[%s4549_s6 + $0x10] sm:$0xff]  }
 0xfa6   :  { %v2050_v51 = vpop.xlane.xlu1 %2049 }
 0xfa7   :  { %3640 = vrcp.f32 %v2050_v51  ;;  %v3561_v51 = vld [vmem:[%s4549_s6 + $0x18] sm:$0xff]  }
 0xfaa   :  { %v2056_v54 = vpop.xlane.xlu1 %2055 }
 0xfab   :  { %3642 = vrcp.f32 %v2056_v54  ;;  %v2053_v31 = vpop.xlane.xlu0 %2052 }
 0xfac   :  { %3644 = vrcp.f32 %v2053_v31 }
 0xfad   :  { %v3639_v32 = vpop.eup %3638 }
 0xfae   :  { %v2075_v55 = vmul.f32 %v3639_v32, %v3623_v52 }
 0xfaf   :  { %v2331_v27 = vpop.permute.xlu0 %2330 }
 0xfb0   :  { %v2083_v57 = vpack.c.bf16 %v2075_v55, %v2075_v55  ;;  %v2336_v3 = vsel %vm761_vm3, %v2331_v27, 0 }
 0xfb1   :  { %v3641_v58 = vpop.eup %3640 }
 0xfb2   :  { %v2076_v60 = vmul.f32 %v3641_v58, %v3625_v44  ;;  %v2062_v62 = vpop.xlane.xlu1 %2061  ;;  %3424 = vmatmul.mubr.msk.bf16.vlgmr.msra.gmra.mrb[56].mxu1 %vm270_vm2, %v2083_v57 }
 0xfb3   :  { %3646 = vrcp.f32 %v2062_v62  ;;  %3434 = vmatpush3.bf16.msra.mxu1 %v2240_v59  ;;  %3435 = vmatprep.mubr.msk.bf16.mxu1 %vm3702_vm1, %v3701_v15 }
 0xfb4   :  { %v2084_v36 = vpack.c.bf16 %v2076_v60, %v2076_v60  ;;  %3445 = vmatprep.subr.bf16.mxu1 %v3701_v15 }
 0xfb5   :  { %v3643_v12 = vpop.eup %3642 }
 0xfb6   :  { %v3645_v63 = vpop.eup %3644  ;;  %3430 = vmatmul.mubr.msk.bf16.vlgmr.msra.gmra.mrb[64].mxu0 %vm270_vm2, %v2084_v36  ;;  %v2078_v48 = vmul.f32 %v3643_v12, %v4356_v16  ;;  %v2379_v19 = vpop.permute.xlu1 %2378 }
 0xfb7   :  { %v2077_v1 = vmul.f32 %v3645_v63, %v4358_v17  ;;  %3440 = vmatpush3.bf16.msra.mxu0 %v2288_v0  ;;  %3441 = vmatprep.mubr.msk.bf16.mxu0 %vm3702_vm1, %v3701_v15  ;;  %v2384_v6 = vsel %vm761_vm3, %v2379_v19, 0 }
 0xfb8   :  { %3451 = vmatprep.subr.bf16.mxu0 %v3701_v15  ;;  %v2086_v61 = vpack.c.bf16 %v2078_v48, %v2078_v48 }
 0xfb9   :  { %v2085_v2 = vpack.c.bf16 %v2077_v1, %v2077_v1 }
 0xfbb   :  { %3436 = vmatmul.mubr.msk.bf16.vlgmr.msra.gmra.mrb[60].mxu1 %vm270_vm2, %v2085_v2 }
 0xfbc   :  { %3446 = vmatpush3.bf16.msra.mxu1 %v2336_v3  ;;  %3447 = vmatprep.mubr.msk.bf16.mxu1 %vm3702_vm1, %v3701_v15 }
 0xfbd   :  { %v3647_v4 = vpop.eup %3646  ;;  %3457 = vmatprep.subr.bf16.mxu1 %v3701_v15 }
 0xfbe   :  { %3442 = vmatmul.mubr.msk.bf16.vlgmr.msra.gmra.mrb[68].mxu0 %vm270_vm2, %v2086_v61  ;;  %v2080_v7 = vmul.f32 %v3647_v4, %v4365_v25 }
 0xfbf   :  { %3452 = vmatpush3.bf16.msra.mxu0 %v2384_v6  ;;  %3453 = vmatprep.mubr.msk.bf16.mxu0 %vm3702_vm1, %v3701_v15 }
 0xfc0   :  { %3463 = vmatprep.subr.bf16.mxu0 %v3701_v15  ;;  %v2088_v8 = vpack.c.bf16 %v2080_v7, %v2080_v7 }
 0xfc6   :  { %3454 = vmatmul.mubr.msk.bf16.vlgmr.msra.gmra.mrb[72].mxu0 %vm270_vm2, %v2088_v8 }
 0xfc7   :  { %3467 = vmatprep.mubr.msk.bf16.mxu0 %vm3702_vm1, %v3701_v15  ;;  %3464 = vmatpush3.bf16.msra.mxu0 %v3560_v50  ;;  %v3091_v50 = vld [vmem:[%s4552_s9 + $0x1] ss:$0 sm:$0xff] }
 0xfc8   :  { %3465 = vmatprep.subr.bf16.mxu0 %v3701_v15 }
 0xfcb   :  { %3466 = vmatpush3.bf16.msra.mxu0 %v3561_v51 }
 0xfcc   :  { %3479 = vmatprep.subr.bf16.mxu0 %v3701_v15 }
 0xfe0   :  { %v2059_v10 = vpop.xlane.xlu0 %2058 }
 0xfe1   :  { %3648 = vrcp.f32 %v2059_v10 }
 0xfe4   :  { %v2065_v11 = vpop.xlane.xlu0 %2064 }
 0xfe5   :  { %3650 = vrcp.f32 %v2065_v11 }
 0xfe8   :  { %v2427_v56 = vpop.permute.xlu0 %2426 }
 0xfe9   :  { %v2432_v13 = vsel %vm761_vm3, %v2427_v56, 0 }
 0xfeb   :  { %v3649_v52 = vpop.eup %3648 }
 0xfec   :  { %v2079_v28 = vmul.f32 %v3649_v52, %v4376_v43  ;;  %v3084_v52 = vld [vmem:[%s4550_s7 + $0x1] ss:$0 sm:$0xff] }
 0xfee   :  { %v2087_v5 = vpack.c.bf16 %v2079_v28, %v2079_v28 }
 0xfef   :  { %v3651_v44 = vpop.eup %3650 }
 0xff0   :  { %3448 = vmatmul.mubr.msk.bf16.vlgmr.msra.gmra.mrb[64].mxu1 %vm270_vm2, %v2087_v5  ;;  %v2081_v14 = vmul.f32 %v3651_v44, %v4380_v49 }
 0xff1   :  { %3458 = vmatpush3.bf16.msra.mxu1 %v2432_v13  ;;  %3459 = vmatprep.mubr.msk.bf16.mxu1 %vm3702_vm1, %v3701_v15 }
 0xff2   :  { %3471 = vmatprep.subr.bf16.mxu1 %v3701_v15  ;;  %v2089_v45 = vpack.c.bf16 %v2081_v14, %v2081_v14 }
 0xff8   :  { %3460 = vmatmul.mubr.msk.bf16.vlgmr.msra.gmra.mrb[68].mxu1 %vm270_vm2, %v2089_v45 }
 0xff9   :  { %3475 = vmatprep.mubr.msk.bf16.mxu1 %vm3702_vm1, %v3701_v15 }
0x1030   :  { %v2132_v16 = vpop.f32.mrb[60].mxu0 }
0x1031   :  { %v3419_v17 = vpop.f32.mrb[61].mxu0 }
0x1032   :  { %v2135_v18 = vpop.f32.mrb[62].mxu0 }
0x1033   :  { %v3420_v21 = vpop.f32.mrb[63].mxu0 }
0x1085   :  { %v2180_v22 = vpop.f32.mrb[56].mxu1 }
0x1086   :  { %v3425_v23 = vpop.f32.mrb[57].mxu1 }
0x1087   :  { %v2183_v24 = vpop.f32.mrb[58].mxu1 }
0x1088   :  { %v3426_v25 = vpop.f32.mrb[59].mxu1 }
0x1089   :  { %v2228_v26 = vpop.f32.mrb[64].mxu0 }
0x108a   :  { %v3431_v20 = vpop.f32.mrb[65].mxu0 }
0x108b   :  { %v2231_v29 = vpop.f32.mrb[66].mxu0 }
0x108c   :  { %v3432_v33 = vpop.f32.mrb[67].mxu0 }
0x108e   :  { %v2276_v34 = vpop.f32.mrb[60].mxu1 }
0x108f   :  { %v3437_v38 = vpop.f32.mrb[61].mxu1 }
0x1090   :  { %v2279_v39 = vpop.f32.mrb[62].mxu1 }
0x1091   :  { %v3438_v42 = vpop.f32.mrb[63].mxu1  ;;  %v2324_v43 = vpop.f32.mrb[68].mxu0 }
0x1092   :  { %v3443_v30 = vpop.f32.mrb[69].mxu0 }
0x1093   :  { %v2327_v49 = vpop.f32.mrb[70].mxu0 }
0x1094   :  { %v3444_v37 = vpop.f32.mrb[71].mxu0 }
0x1099   :  { %v2420_v53 = vpop.f32.mrb[72].mxu0 }
0x109a   :  { %v3538_v35 = vpack.i.bf16 %v2420_v53, %v2228_v26  ;;  %v3455_v40 = vpop.f32.mrb[73].mxu0 }
0x109b   :  { %v2423_v46 = vpop.f32.mrb[74].mxu0 }
0x109c   :  { %v3456_v47 = vpop.f32.mrb[75].mxu0  ;;  %3539 = vrot.lane.b32.xlu0 %v3538_v35, %s4580_s4  ;;  %v3090_v35 = vld [vmem:[%s4551_s8 + $0x1] ss:$0 sm:$0xff] }
0x10c3   :  { %v2372_v54 = vpop.f32.mrb[64].mxu1 }
0x10c4   :  { %v3533_v31 = vpack.i.bf16 %v2372_v54, %v2180_v22  ;;  %v3449_v32 = vpop.f32.mrb[65].mxu1 }
0x10c5   :  { %v2375_v55 = vpop.f32.mrb[66].mxu1 }
0x10c6   :  { %3534 = vrot.lane.b32.xlu1 %v3533_v31, %s4581_s25  ;;  %v3450_v57 = vpop.f32.mrb[67].mxu1  ;;  %v3564_v55 = vld [vmem:[%s4555_s12 + $0x20] sm:$0xff]  }
0x10c7   :  { %v3565_v57 = vld [vmem:[%s4555_s12 + $0x28] sm:$0xff]  }
0x10cb   :  { %v2468_v58 = vpop.f32.mrb[68].mxu1 }
0x10cc   :  { %v3543_v59 = vpack.i.bf16 %v2468_v58, %v2276_v34  ;;  %v3461_v60 = vpop.f32.mrb[69].mxu1  ;;  %v3563_v34 = vld [vmem:[%s4553_s10 + $0x18] sm:$0xff]   ;;  %v3566_v58 = vld [vmem:[%s4555_s12 + $0x30] sm:$0xff]  }
0x10cd   :  { %v2471_v62 = vpop.f32.mrb[70].mxu1  ;;  %v3097_v60 = vld [vmem:[%s4554_s11 + $0x1] ss:$0 sm:$0xff] }
0x10ce   :  { %3544 = vrot.lane.b32.xlu1 %v3543_v59, %s4582_s3  ;;  %v3462_v36 = vpop.f32.mrb[71].mxu1  ;;  %v3567_v59 = vld [vmem:[%s4555_s12 + $0x38] sm:$0xff]  }
0x110e   :  { %v3540_v1 = vpop.permute.xlu0 %3539 }
0x110f   :  { %v3542_v2 = vunpack.i.h.bf16 %v3540_v1  ;;  %v3541_v3 = vunpack.i.l.bf16 %v3540_v1 }
0x1138   :  { %v3535_v12 = vpop.permute.xlu1 %3534 }
0x1139   :  { %v3537_v63 = vunpack.i.h.bf16 %v3535_v12  ;;  %v3536_v0 = vunpack.i.l.bf16 %v3535_v12 }
0x113b   :  { %v2501_v48 = vsel %vm270_vm2, %v2324_v43, %v3537_v63  ;;  %v2486_v27 = vsel %vm270_vm2, %v2132_v16, %v3536_v0 }
0x113c   :  { %v2487_v6 = vsel %vm1154_vm4, %v2486_v27, %v3541_v3  ;;  %v2502_v7 = vsel %vm1154_vm4, %v2501_v48, %v3542_v2 }
0x1140   :  { %v3545_v19 = vpop.permute.xlu1 %3544 }
0x1141   :  { %v3547_v61 = vunpack.i.h.bf16 %v3545_v19  ;;  %v3546_v4 = vunpack.i.l.bf16 %v3545_v19 }
0x1143   :  { %v2503_v8 = vsel %vm1156_vm5, %v2502_v7, %v3547_v61  ;;  %v2488_v10 = vsel %vm1156_vm5, %v2487_v6, %v3546_v4 }
0x1144   :  { %v2504_v11 = vpack.c.bf16 %v2503_v8, %v2488_v10 }
0x1146   :  { %3468 = vmatmul.mubr.msk.bf16.vlgmr.msra.gmra.mrb[76].mxu0 %vm79_vm0, %v2504_v11 }
0x1147   :  { %3487 = vmatprep.mubr.msk.bf16.mxu0 %vm3702_vm1, %v3701_v15  ;;  %3480 = vmatpush3.bf16.msra.mxu0 %v3564_v55 }
0x1148   :  { %3481 = vmatprep.subr.bf16.mxu0 %v3701_v15 }
0x114b   :  { %3482 = vmatpush3.bf16.msra.mxu0 %v3565_v57 }
0x114c   :  { %3483 = vmatprep.subr.bf16.mxu0 %v3701_v15 }
0x114f   :  { %3484 = vmatpush3.bf16.msra.mxu0 %v3566_v58 }
0x1150   :  { %3485 = vmatprep.subr.bf16.mxu0 %v3701_v15 }
0x1153   :  { %3486 = vmatpush3.bf16.msra.mxu0 %v3567_v59  ;;  %v3119_v59 = vld [vmem:[%s4558_s15 + $0x1] ss:$0 sm:$0xff] }
0x1219   :  { %v2567_v28 = vpop.f32.mrb[76].mxu0 }
0x121a   :  { %v2568_v56 = vadd.f32 %v3084_v52, %v2567_v28  ;;  %v3469_v5 = vpop.f32.mrb[77].mxu0 }
0x121b   :  { %v2570_v44 = vpop.f32.mrb[78].mxu0 }
0x121c   :  { %v2571_v13 = vadd.f32 %v3084_v52, %v2570_v44  ;;  %v3470_v14 = vpop.f32.mrb[79].mxu0  ;;  %v2574_v45 = vadd.f32 %v2568_v56, %v4197_v41 }
0x121e   :  { %v2580_v16 = vsel %vm79_vm0, %v2574_v45, 0.0  ;;  %v2575_v17 = vadd.f32 %v2571_v13, %v4199_v9  ;;  %v3562_v9 = vld [vmem:[%s4553_s10 + $0x10] sm:$0xff]  }
0x121f   :  { %2581 = vadd.xlane.f32.xlu0 %v2580_v16  ;;  %3472 = vmatpush3.bf16.msra.mxu1 %v3562_v9 }
0x1220   :  { %v2583_v18 = vsel %vm79_vm0, %v2575_v17, 0.0  ;;  %3473 = vmatprep.subr.bf16.mxu1 %v3701_v15 }
0x1221   :  { %2584 = vadd.xlane.f32.xlu1 %v2583_v18 }
0x1223   :  { %3474 = vmatpush3.bf16.msra.mxu1 %v3563_v34 }
0x1224   :  { %3491 = vmatprep.subr.bf16.mxu1 %v3701_v15 }
0x12ac   :  { %v2582_v21 = vpop.xlane.xlu0 %2581 }
0x12ad   :  { %v2586_v22 = vmul.f32 0.03125, %v2582_v21 }
0x12ae   :  { %v2585_v23 = vpop.xlane.xlu1 %2584 }
0x12af   :  { %v2588_v24 = vsub.f32 %v2574_v45, %v2586_v22  ;;  %v2587_v25 = vmul.f32 0.03125, %v2585_v23  ;;  %v3110_v45 = vld [vmem:[%s4556_s13 + $0x1] ss:$0 sm:$0xff] }
0x12b1   :  { %v2589_v26 = vsub.f32 %v2575_v17, %v2587_v25  ;;  %v2590_v20 = vmul.f32 %v2588_v24, %v2588_v24 }
0x12b3   :  { %v2592_v29 = vsel %vm79_vm0, %v2590_v20, 0.0  ;;  %v2591_v33 = vmul.f32 %v2589_v26, %v2589_v26 }
0x12b4   :  { %2593 = vadd.xlane.f32.xlu0 %v2592_v29 }
0x12b5   :  { %v2595_v41 = vsel %vm79_vm0, %v2591_v33, 0.0 }
0x12b8   :  { %2596 = vadd.xlane.f32.xlu0 %v2595_v41 }
0x1341   :  { %v2594_v38 = vpop.xlane.xlu0 %2593 }
0x1342   :  { %v2598_v39 = vmul.f32 0.03125, %v2594_v38 }
0x1344   :  { %v2600_v42 = vadd.f32 1e-12, %v2598_v39 }
0x1345   :  { %v2597_v43 = vpop.xlane.xlu0 %2596 }
0x1346   :  { %3652 = vrsqrt.f32 %v2600_v42  ;;  %v2599_v30 = vmul.f32 0.03125, %v2597_v43 }
0x1348   :  { %v2601_v49 = vadd.f32 1e-12, %v2599_v30 }
0x134a   :  { %3654 = vrsqrt.f32 %v2601_v49  ;;  %v3568_v49 = vld [vmem:[%s4559_s16] sm:$0xff]  }
0x1350   :  { %v3653_v37 = vpop.eup %3652 }
0x1351   :  { %v2604_v53 = vmul.f32 %v3653_v37, %v2588_v24  ;;  %v3569_v37 = vld [vmem:[%s4559_s16 + $0x8] sm:$0xff]  }
0x1353   :  { %v2612_v46 = vmul.f32 %v3090_v35, %v2604_v53 }
0x1354   :  { %v3655_v40 = vpop.eup %3654 }
0x1355   :  { %v2605_v47 = vmul.f32 %v3655_v40, %v2589_v26  ;;  %v2620_v54 = vadd.f32 %v3091_v50, %v2612_v46 }
0x1357   :  { %v2613_v51 = vmul.f32 %v3090_v35, %v2605_v47 }
0x1359   :  { %v2621_v31 = vadd.f32 %v3091_v50, %v2613_v51 }
0x135b   :  { %v2622_v32 = vpack.c.bf16 %v2621_v31, %v2620_v54 }
0x135d   :  { %3476 = vmatmul.mubr.msk.bf16.vlgmr.msra.gmra.mrb[72].mxu1 %vm79_vm0, %v2622_v32  ;;  %v3118_v32 = vld [vmem:[%s4557_s14 + $0x1] ss:$0 sm:$0xff] }
0x135e   :  { %3495 = vmatprep.mubr.msk.bf16.mxu1 %vm3702_vm1, %v3701_v15  ;;  %3492 = vmatpush3.bf16.msra.mxu1 %v3568_v49 }
0x135f   :  { %3493 = vmatprep.subr.bf16.mxu1 %v3701_v15 }
0x1362   :  { %3494 = vmatpush3.bf16.msra.mxu1 %v3569_v37 }
0x1363   :  { %3499 = vmatprep.subr.bf16.mxu1 %v3701_v15 }
0x1430   :  { %v2685_v62 = vpop.f32.mrb[72].mxu1 }
0x1431   :  { %v2686_v36 = vadd.f32 %v3097_v60, %v2685_v62  ;;  %v3477_v12 = vpop.f32.mrb[73].mxu1 }
0x1432   :  { %v2688_v63 = vpop.f32.mrb[74].mxu1 }
0x1433   :  { %v2694_v0 = vmul.f32 0.044715, %v2686_v36  ;;  %v2689_v1 = vadd.f32 %v3097_v60, %v2688_v63  ;;  %v3478_v48 = vpop.f32.mrb[75].mxu1  ;;  %v2692_v28 = vmul.f32 0.5, %v2686_v36 }
0x1434   :  { %v3120_v48 = vld [vmem:[%s4560_s17] ss:$0 sm:$0xff]  ;;  %s3711_s17 = smov [#allocation2]  }
0x1435   :  { %v2696_v27 = vmul.f32 %v2694_v0, %v2686_v36  ;;  %v2695_v2 = vmul.f32 0.044715, %v2689_v1  ;;  %v2693_v56 = vmul.f32 0.5, %v2689_v1  ;;  %v3570_v0 = vld [vmem:[%s4561_s18] sm:$0xff]  }
0x1437   :  { %v2698_v3 = vmul.f32 %v2696_v27, %v2686_v36  ;;  %v2697_v19 = vmul.f32 %v2695_v2, %v2689_v1 }
0x1439   :  { %v2700_v61 = vadd.f32 %v2698_v3, %v2686_v36  ;;  %v2699_v4 = vmul.f32 %v2697_v19, %v2689_v1 }
0x143b   :  { %v2702_v6 = vmul.f32 0.7978846, %v2700_v61  ;;  %v2701_v7 = vadd.f32 %v2699_v4, %v2689_v1  ;;  %v3571_v1 = vld [vmem:[%s4561_s18 + $0x8] sm:$0xff]   ;;  %s2998_s18 = sshll.u32 %s3711_s17, 4  ;;  %s2999_s18 = int_to_ptr.vmem [resolvable:$true] %s2998_s18 }
0x143c   :  { %s3677_s23 = scalar_lea.vmem %s2999_s18, 32  ;;  %p3682_p1 = scmp.lt.s32.totalorder %s2999_s18, %s2999_s18 }
0x143d   :  { %3656 = vtanh.f32 %v2702_v6  ;;  %v2703_v8 = vmul.f32 0.7978846, %v2701_v7  ;;  %p3678_p0 = scmp.ne.s32.totalorder %s2999_s18, %s3677_s23  ;;  %p3683_p2 = scmp.lt.s32.totalorder %s3677_s23, %s3677_s23 }
0x143f   :  { %3658 = vtanh.f32 %v2703_v8  ;;  %p3684_p3 = por %p3683_p2, %p3682_p1 }
0x1441   :  { %p3685_p4 = pnand %p3684_p3, %p3678_p0 }
0x1447   :  { %v3657_v10 = vpop.eup %3656 }
0x1448   :  { %v2706_v11 = vadd.f32 1.0, %v3657_v10 }
0x1449   :  { %v3659_v52 = vpop.eup %3658 }
0x144a   :  { %v2707_v5 = vadd.f32 1.0, %v3659_v52  ;;  %v2708_v44 = vmul.f32 %v2706_v11, %v2692_v28 }
0x144c   :  { %v2709_v13 = vmul.f32 %v2707_v5, %v2693_v56 }
0x144e   :  { %v2710_v14 = vpack.c.bf16 %v2709_v13, %v2708_v44 }
0x1450   :  { %3488 = vmatmul.mubr.msk.bf16.vlgmr.msra.gmra.mrb[80].mxu0 %vm1413_vm6, %v2710_v14 }
0x1523   :  { %v2789_v16 = vpop.f32.mrb[80].mxu0 }
0x1524   :  { %v2790_v17 = vadd.f32 %v3110_v45, %v2789_v16  ;;  %v3489_v18 = vpop.f32.mrb[81].mxu0 }
0x1525   :  { %v2792_v21 = vpop.f32.mrb[82].mxu0 }
0x1526   :  { %v2796_v22 = vadd.f32 %v2790_v17, %v2620_v54  ;;  %v2793_v23 = vadd.f32 %v3110_v45, %v2792_v21  ;;  %v3490_v24 = vpop.f32.mrb[83].mxu0 }
0x1528   :  { %v2797_v25 = vadd.f32 %v2793_v23, %v2621_v31  ;;  %v2802_v26 = vsel %vm79_vm0, %v2796_v22, 0.0 }
0x1529   :  { %2803 = vadd.xlane.f32.xlu1 %v2802_v26 }
0x152a   :  { %v2805_v20 = vsel %vm79_vm0, %v2797_v25, 0.0 }
0x152b   :  { %2806 = vadd.xlane.f32.xlu0 %v2805_v20 }
0x15b6   :  { %v2804_v29 = vpop.xlane.xlu1 %2803 }
0x15b7   :  { %v2808_v33 = vmul.f32 0.03125, %v2804_v29 }
0x15b8   :  { %v2807_v41 = vpop.xlane.xlu0 %2806 }
0x15b9   :  { %v2810_v9 = vsub.f32 %v2796_v22, %v2808_v33  ;;  %v2809_v34 = vmul.f32 0.03125, %v2807_v41 }
0x15bb   :  { %v2811_v38 = vsub.f32 %v2797_v25, %v2809_v34  ;;  %v2812_v39 = vmul.f32 %v2810_v9, %v2810_v9 }
0x15bd   :  { %v2814_v42 = vsel %vm79_vm0, %v2812_v39, 0.0  ;;  %v2813_v43 = vmul.f32 %v2811_v38, %v2811_v38 }
0x15be   :  { %2815 = vadd.xlane.f32.xlu1 %v2814_v42 }
0x15bf   :  { %v2817_v30 = vsel %vm79_vm0, %v2813_v43, 0.0 }
0x15c0   :  { %2818 = vadd.xlane.f32.xlu0 %v2817_v30 }
0x164b   :  { %v2816_v53 = vpop.xlane.xlu1 %2815 }
0x164c   :  { %v2820_v35 = vmul.f32 0.03125, %v2816_v53 }
0x164d   :  { %v2819_v40 = vpop.xlane.xlu0 %2818 }
0x164e   :  { %v2822_v46 = vadd.f32 1e-12, %v2820_v35  ;;  %v2821_v47 = vmul.f32 0.03125, %v2819_v40 }
0x1650   :  { %3660 = vrsqrt.f32 %v2822_v46  ;;  %v2823_v50 = vadd.f32 1e-12, %v2821_v47 }
0x1652   :  { %3662 = vrsqrt.f32 %v2823_v50 }
0x165a   :  { %v3661_v51 = vpop.eup %3660 }
0x165b   :  { %v2826_v54 = vmul.f32 %v3661_v51, %v2810_v9 }
0x165c   :  { %v3663_v31 = vpop.eup %3662 }
0x165d   :  { %v2827_v55 = vmul.f32 %v3663_v31, %v2811_v38  ;;  %v2834_v57 = vmul.f32 %v3118_v32, %v2826_v54 }
0x165f   :  { %v2835_v58 = vmul.f32 %v3118_v32, %v2827_v55  ;;  %v2842_v62 = vadd.f32 %v3119_v59, %v2834_v57 }
0x1661   :  { %v2843_v60 = vadd.f32 %v3119_v59, %v2835_v58 }
0x1663   :  { %v2845_v36 = vrot.slane %v2843_v60, 7 }
0x1665   :  { %v2848_v12 = vsel %vm2847_vm7, %v2842_v62, %v2845_v36 }
0x1666   :  { %v2849_v63 = vpack.c.bf16 %v2848_v12, %v2848_v12 }
0x1668   :  { %3496 = vmatmul.mubr.msk.bf16.vlgmr.msra.gmra.mrb[76].mxu1 %vm79_vm0, %v2849_v63 }
0x1669   :  { %3503 = vmatprep.mubr.msk.bf16.mxu1 %vm3702_vm1, %v3701_v15  ;;  %3500 = vmatpush3.bf16.msra.mxu1 %v3570_v0 }
0x166a   :  { %3501 = vmatprep.subr.bf16.mxu1 %v3701_v15  ;;  %v3124_v15 = vld [vmem:[%s4562_s19] ss:$0 sm:$0xff] }
0x166d   :  { %3502 = vmatpush3.bf16.msra.mxu1 %v3571_v1 }
0x173b   :  { %v2910_v27 = vpop.f32.mrb[76].mxu1 }
0x173c   :  { %v2911_v2 = vadd.f32 %v3120_v48, %v2910_v27  ;;  %v3497_v3 = vpop.f32.mrb[77].mxu1 }
0x173d   :  { %v2913_v19 = vpop.f32.mrb[78].mxu1 }
0x173e   :  { %3664 = vtanh.f32 %v2911_v2  ;;  %v3498_v61 = vpop.f32.mrb[79].mxu1 }
0x1748   :  { %v3665_v4 = vpop.eup %3664 }
0x1749   :  { %v2917_v6 = vpack.c.bf16 %v3665_v4, %v3665_v4 }
0x174b   :  { %3504 = vmatmul.mubr.msk.bf16.vlgmr.msra.gmra.mrb[80].mxu1 %vm79_vm0, %v2917_v6 }
0x181e   :  { %v2978_v7 = vpop.f32.mrb[80].mxu1 }
0x181f   :  { %v2979_v8 = vadd.f32 %v3124_v15, %v2978_v7  ;;  %v3505_v10 = vpop.f32.mrb[81].mxu1 }
0x1820   :  { %v2981_v11 = vpop.f32.mrb[82].mxu1 }
0x1821   :  { %v3128_v52 = vmul.f32 -1.442695, %v2979_v8  ;;  %v3506_v28 = vpop.f32.mrb[83].mxu1 }
0x1823   :  { %3666 = vpow2.f32 %v3128_v52 }
0x182d   :  { %v3667_v56 = vpop.eup %3666 }
0x182e   :  { %v2987_v5 = vadd.f32 1.0, %v3667_v56 }
0x1830   :  { %3668 = vrcp.f32 %v2987_v5 }
0x183a   :  { %v3669_v44 = vpop.eup %3668 }
0x183b   :  { %2991 = vst.msk [vmem:[#allocation2] sm:$0x3] %vm2990_vm8, %v3669_v44 }
0x183c   :  { %3688 = shalt.err (!%p3685_p4)
}
0x183d   :  { %s3689_s4 = scalar_lea.hbm %s4563_s20, 32 }
0x183e   :  { %p3690_p5 = scmp.ne.s32.totalorder %s4563_s20, %s3689_s4  ;;  %p3693_p6 = scmp.lt.u32.totalorder %s3689_s4, %s4563_s20 }
0x1840   :  { %p3695_p7 = pnand %p3693_p6, %p3690_p5 }
0x1842   :  { %3698 = shalt.err (!%p3695_p7)
}
0x1843   :  { %3001 = dma.vmem_to_hbm [thread:$0]  %s2999_s18, 32, %s4563_s20, [#allocation3]  }
0x1844   :  { %3699 = dma.done.wait [#allocation3], 32  }
0x1845   :  { %3700 = vsyncadd [#allocation3], 4294967264 }
0x1846   :  { %3005 = vsyncpa [#allocation3], 1 }

</bundles_post_ra>
